<compile_context>
chip_gen: v7x
topology: tpu7x:2x2x1
jax: 0.10.0
libtpu: 0.0.40
codegen_flags: <defaults>
</compile_context>

<pallas_src>
import jax
import jax.numpy as jnp
from jax.experimental import pallas as pl
from jax.experimental.pallas import tpu as pltpu


_LANE = 128
_SUBLANE = 8
_VMEM_TILE_BUDGET = 40 << 20   # per-call working-set target (fits v7x 64 MiB VMEM)
_W_RESIDENT_MAX = 20 << 20     # above this RHS size, K-tile instead of full-resident
_VMEM_LIMIT_CAP = 64 << 20     # never ask for more than v7x physical VMEM
_VMEM_LIMIT_FLOOR = 16 << 20


def _round_up(a, b):
    return (a + b - 1) // b * b


# --------------------------------------------------------------------------
# Kernels
# --------------------------------------------------------------------------
def _wide_matmul_kernel(x_ref, w_ref, o_ref):
    # x: [tm, k]  w: [k, n_pad] (grid-invariant, VMEM resident)  o: [tm, n_pad]
    o_ref[...] = jnp.dot(
        x_ref[...], w_ref[...], preferred_element_type=jnp.float32
    ).astype(o_ref.dtype)


def _wide_matmul_ktiled_kernel(x_ref, w_ref, o_ref, acc_ref):
    # K-tiled variant: grid = (row_tiles, k_tiles), K innermost ("arbitrary").
    @pl.when(pl.program_id(1) == 0)
    def _():
        acc_ref[...] = jnp.zeros_like(acc_ref)

    acc_ref[...] += jnp.dot(
        x_ref[...], w_ref[...], preferred_element_type=jnp.float32
    )

    @pl.when(pl.program_id(1) == pl.num_programs(1) - 1)
    def _():
        o_ref[...] = acc_ref[...].astype(o_ref.dtype)


# --------------------------------------------------------------------------
# Generic row-tiled wide matmul:  out[rows, n_pad] = x[rows, k] @ rhs[k, n_pad]
# (n_pad must be a multiple of 128 so the output slab is lane-dense.)
# --------------------------------------------------------------------------
def _wide_matmul(x, rhs, *, tm_max=512, tk=None, out_dtype=None):
    rows, kdim = x.shape
    k2, n_pad = rhs.shape
    assert k2 == kdim and n_pad % _LANE == 0
    if out_dtype is None:
        out_dtype = x.dtype
    x_bytes = jnp.dtype(x.dtype).itemsize
    r_bytes = jnp.dtype(rhs.dtype).itemsize
    o_bytes = jnp.dtype(out_dtype).itemsize

    # ---- K tiling decision (only for production-scale feature dims) -------
    if tk is None:
        tk = kdim if kdim * n_pad * r_bytes <= _W_RESIDENT_MAX else 512
    if tk >= kdim:
        tk = kdim
        k_pad = kdim                       # full-K block; equals full array dim
    else:
        tk = max(_LANE, tk // _LANE * _LANE)
        k_pad = _round_up(kdim, tk)
    k_tiles = k_pad // tk

    if k_pad != kdim:                      # zero-pad K only when tiling needs it
        x = jnp.pad(x, ((0, 0), (0, k_pad - kdim)))
        rhs = jnp.pad(rhs, ((0, k_pad - kdim), (0, 0)))

    # ---- row tile sized against the VMEM budget ----------------------------
    fixed = 2 * tk * n_pad * r_bytes                    # RHS (worst case 2-buf)
    per_row = 2 * tk * x_bytes + 2 * n_pad * o_bytes    # x + out, double-buffered
    if k_tiles > 1:
        per_row += n_pad * 4                            # f32 accumulator scratch
    avail = max(_VMEM_TILE_BUDGET - fixed, 0)
    tm_fit = max(_SUBLANE, (avail // per_row) // _SUBLANE * _SUBLANE)
    tm = min(tm_max, tm_fit, _round_up(rows, _SUBLANE))
    rows_pad = _round_up(rows, tm)
    if rows_pad != rows:
        x = jnp.pad(x, ((0, rows_pad - rows), (0, 0)))

    vmem_limit = int(min(_VMEM_LIMIT_CAP,
                         max(_VMEM_LIMIT_FLOOR,
                             int(1.5 * (fixed + tm * per_row)) + (2 << 20))))

    cost = pl.CostEstimate(
        flops=2 * rows * kdim * n_pad,
        transcendentals=0,
        bytes_accessed=x_bytes * rows * kdim + r_bytes * kdim * n_pad
        + o_bytes * rows * n_pad,
    )
    out_shape = jax.ShapeDtypeStruct((rows_pad, n_pad), out_dtype)

    if k_tiles == 1:
        def call(single_buffer_rhs):
            rhs_kwargs = (
                dict(pipeline_mode=pl.Buffered(1)) if single_buffer_rhs else {}
            )
            return pl.pallas_call(
                _wide_matmul_kernel,
                out_shape=out_shape,
                grid=(rows_pad // tm,),
                in_specs=[
                    pl.BlockSpec((tm, k_pad), lambda i: (i, 0)),
                    pl.BlockSpec((k_pad, n_pad), lambda i: (0, 0), **rhs_kwargs),
                ],
                out_specs=pl.BlockSpec((tm, n_pad), lambda i: (i, 0)),
                compiler_params=pltpu.CompilerParams(
                    dimension_semantics=("parallel",),
                    vmem_limit_bytes=vmem_limit),
                cost_estimate=cost,
            )(x, rhs)

        try:
            # Grid-invariant RHS: single-buffer it to reclaim VMEM (v7x).
            return call(True)
        except Exception:
            # pipeline_mode / Buffered(1) not supported by this build: default.
            return call(False)

    return pl.pallas_call(
        _wide_matmul_ktiled_kernel,
        out_shape=out_shape,
        grid=(rows_pad // tm, k_tiles),           # K innermost (reduction last)
        in_specs=[
            pl.BlockSpec((tm, tk), lambda i, k: (i, k)),
            pl.BlockSpec((tk, n_pad), lambda i, k: (k, 0)),
        ],
        out_specs=pl.BlockSpec((tm, n_pad), lambda i, k: (i, 0)),
        scratch_shapes=[pltpu.VMEM((tm, n_pad), jnp.float32)],
        compiler_params=pltpu.CompilerParams(
            dimension_semantics=("parallel", "arbitrary"),
            vmem_limit_bytes=vmem_limit),
        cost_estimate=cost,
    )(x, rhs)


# --------------------------------------------------------------------------
# One DCF side:  returns (proj, second_order) == (x@w@p, x@w@ww)
# --------------------------------------------------------------------------
def _dcf_side(x, w, p, ww, *, tm_max=512, tk=None, compute_dtype=None):
    rows, f = x.shape
    h = p.shape[1]
    n_pad = _round_up(f + h, _LANE)        # lane-dense output slab

    # Wide RHS [ww | p], zero-padded on N. (Slicing U/V out at column f is a
    # small unaligned slice when f % 128 != 0 -- acceptable at these sizes.)
    wp = jnp.concatenate([ww, p], axis=1)
    wp = jnp.pad(wp, ((0, 0), (0, n_pad - (f + h))))

    if compute_dtype is not None:
        # bf16 operands, f32 MXU accumulation (recommended on v6e/v7x).
        x, w, wp = (a.astype(compute_dtype) for a in (x, w, wp))

    # Associativity rewrite: W_eff = w @ [ww | p], computed ONCE (tiny prologue
    # Pallas matmul), so the row-scaling call below is a single matmul.
    w_eff = _wide_matmul(w, wp, tm_max=tm_max, tk=tk)[:f]

    out = _wide_matmul(x, w_eff, tm_max=tm_max, tk=tk)
    proj = out[:rows, f:f + h]             # U or V
    second = out[:rows, :f]                # U_2 or V_2
    return proj, second


class DCFParams:
    """Deterministic parameter init matching Model.__init__ shapes."""

    def __init__(self, userf, itemf, h_dim, key):
        k = jax.random.split(key, 6)
        self.w1 = jax.random.normal(k[0], (userf, userf), jnp.float32)
        self.w2 = jax.random.normal(k[1], (itemf, itemf), jnp.float32)
        self.p1 = jax.random.normal(k[2], (userf, h_dim), jnp.float32)
        self.p2 = jax.random.normal(k[3], (itemf, h_dim), jnp.float32)
        self.w11 = jax.random.normal(k[4], (userf, userf), jnp.float32)
        self.w22 = jax.random.normal(k[5], (itemf, itemf), jnp.float32)


def dcf_forward(params, users, items, *, tm_max=512, tk=None,
                compute_dtype=None, xla_bypass_max_rows=0):
    """Forward pass of Model.forward: returns (U, V, U_2, V_2)."""
    # Degenerate-shape bypass (opt-in): at trivial sizes the kernel is pure
    # launch/pipeline-warmup overhead, so the caller may route to plain XLA.
    if max(users.shape[0], items.shape[0]) <= xla_bypass_max_rows:
        U1 = users @ params.w1
        V1 = items @ params.w2
        return U1 @ params.p1, V1 @ params.p2, U1 @ params.w11, V1 @ params.w22

    U, U_2 = _dcf_side(users, params.w1, params.p1, params.w11,
                       tm_max=tm_max, tk=tk, compute_dtype=compute_dtype)
    V, V_2 = _dcf_side(items, params.w2, params.p2, params.w22,
                       tm_max=tm_max, tk=tk, compute_dtype=compute_dtype)
    return U, V, U_2, V_2


# TODO(synk): train_batch (SGD loop with autograd) is training-time logic, not
# part of the forward kernel; only forward() is implemented here.


if __name__ == "__main__":
    # Small but non-degenerate shapes: distinct user/item feature dims,
    # distinct row counts, one side needing sublane row padding.
    m, n = 120, 50
    userf, itemf = 256, 192
    h_dim = 32

    key = jax.random.PRNGKey(0)
    kp, ku, ki = jax.random.split(key, 3)
    params = DCFParams(userf, itemf, h_dim, kp)
    users = jax.random.normal(ku, (m, userf), jnp.float32)
    items = jax.random.normal(ki, (n, itemf), jnp.float32)

    # Plain-JAX reference in the PyTorch association order.
    U1_ref = users @ params.w1
    V1_ref = items @ params.w2
    U_ref, U2_ref = U1_ref @ params.p1, U1_ref @ params.w11
    V_ref, V2_ref = V1_ref @ params.p2, V1_ref @ params.w22
    refs = (U_ref, V_ref, U2_ref, V2_ref)

    def check_close(outs, rtol, atol):
        U, V, U_2, V_2 = outs
        assert U.shape == (m, h_dim) and V.shape == (n, h_dim)
        assert U_2.shape == (m, userf) and V_2.shape == (n, itemf)
        for got, ref in zip((U, V, U_2, V_2), refs):
            assert jnp.allclose(got.astype(jnp.float32), ref,
                                rtol=rtol, atol=atol)

    # 1) Default path: single full-K block, VMEM-resident W_eff, row-tiled grid.
    outs = dcf_forward(params, users, items)
    jax.block_until_ready(outs)
    check_close(outs, rtol=5e-3, atol=0.5)

    # 2) Force the K-tiled accumulator path (production-scale feature dims).
    outs_k = dcf_forward(params, users, items, tk=128)
    jax.block_until_ready(outs_k)
    check_close(outs_k, rtol=5e-3, atol=0.5)

    # 3) bf16 operands with f32 accumulation (v6e/v7x recommendation).
    outs_bf = dcf_forward(params, users, items, compute_dtype=jnp.bfloat16)
    jax.block_until_ready(outs_bf)
    for got, ref in zip(outs_bf, refs):
        rel = jnp.linalg.norm(got.astype(jnp.float32) - ref) / jnp.linalg.norm(ref)
        assert float(rel) < 5e-2

    print("KERNEL_OK")
</pallas_src>

<mosaic_0001>
module attributes {stable_mosaic.version = 11 : i64} {
  func.func @_wide_matmul_kernel(%arg0: i32, %arg1: memref<256x256xf32, #tpu.memory_space<vmem>>, %arg2: memref<256x384xf32, #tpu.memory_space<vmem>>, %arg3: memref<256x384xf32, #tpu.memory_space<vmem>>) attributes {dimension_semantics = [#tpu.dimension_semantics<parallel>], iteration_bounds = array<i64: 1>, scalar_prefetch = 0 : i64, scratch_operands = 0 : i64, tpu.core_type = #tpu.core_type<tc>, window_params = [{transform_indices = @transform_0, window_bounds = array<i64: 256, 256>}, {pipeline_mode = #tpu.pipeline_mode<synchronous>, transform_indices = @transform_1, window_bounds = array<i64: 256, 384>}, {transform_indices = @transform_2, window_bounds = array<i64: 256, 384>}]} {
    %c0 = arith.constant 0 : index
    %c0_0 = arith.constant 0 : index
    %0 = vector.load %arg1[%c0, %c0_0] : memref<256x256xf32, #tpu.memory_space<vmem>>, vector<256x256xf32>
    %c0_1 = arith.constant 0 : index
    %c0_2 = arith.constant 0 : index
    %1 = vector.load %arg2[%c0_1, %c0_2] : memref<256x384xf32, #tpu.memory_space<vmem>>, vector<256x384xf32>
    %cst = arith.constant dense<0.000000e+00> : vector<256x384xf32>
    %2 = tpu.matmul %0, %1, %cst {dimension_numbers = #tpu.dot_dimension_numbers<[1], [0], [0], [1], [0, 0, 1, 1], [], []>} : vector<256x256xf32>, vector<256x384xf32>, vector<256x384xf32> -> vector<256x384xf32>
    %c0_3 = arith.constant 0 : index
    %c0_4 = arith.constant 0 : index
    %3 = vector.load %arg3[%c0_3, %c0_4] : memref<256x384xf32, #tpu.memory_space<vmem>>, vector<256x384xf32>
    tpu.vector_store %arg3[%c0_3, %c0_4], %2 {strides = array<i32>} : memref<256x384xf32, #tpu.memory_space<vmem>>, vector<256x384xf32>,
    return
  }
  func.func @transform_0(%arg0: i32) -> (i32, i32) {
    %c0_i32 = arith.constant 0 : i32
    %c0_i32_0 = arith.constant 0 : i32
    return %arg0, %c0_i32 : i32, i32
  }
  func.func @transform_1(%arg0: i32) -> (i32, i32) {
    %c0_i32 = arith.constant 0 : i32
    %c0_i32_0 = arith.constant 0 : i32
    %c0_i32_1 = arith.constant 0 : i32
    return %c0_i32, %c0_i32_0 : i32, i32
  }
  func.func @transform_2(%arg0: i32) -> (i32, i32) {
    %c0_i32 = arith.constant 0 : i32
    %c0_i32_0 = arith.constant 0 : i32
    return %arg0, %c0_i32 : i32, i32
  }
}

module attributes {stable_mosaic.version = 11 : i64} {
  func.func @_wide_matmul_kernel(%arg0: i32, %arg1: memref<256x256xf32, #tpu.memory_space<vmem>>, %arg2: memref<256x384xf32, #tpu.memory_space<vmem>>, %arg3: memref<256x384xf32, #tpu.memory_space<vmem>>) attributes {dimension_semantics = [#tpu.dimension_semantics<parallel>], iteration_bounds = array<i64: 1>, scalar_prefetch = 0 : i64, scratch_operands = 0 : i64, tpu.core_type = #tpu.core_type<tc>, window_params = [{transform_indices = @transform_0, window_bounds = array<i64: 256, 256>}, {pipeline_mode = #tpu.pipeline_mode<synchronous>, transform_indices = @transform_1, window_bounds = array<i64: 256, 384>}, {transform_indices = @transform_2, window_bounds = array<i64: 256, 384>}]} {
    %c0 = arith.constant 0 : index
    %c0_0 = arith.constant 0 : index
    %0 = vector.load %arg1[%c0, %c0_0] : memref<256x256xf32, #tpu.memory_space<vmem>>, vector<256x256xf32>
    %c0_1 = arith.constant 0 : index
    %c0_2 = arith.constant 0 : index
    %1 = vector.load %arg2[%c0_1, %c0_2] : memref<256x384xf32, #tpu.memory_space<vmem>>, vector<256x384xf32>
    %cst = arith.constant dense<0.000000e+00> : vector<256x384xf32>
    %2 = tpu.matmul %0, %1, %cst {dimension_numbers = #tpu.dot_dimension_numbers<[1], [0], [0], [1], [0, 0, 1, 1], [], []>} : vector<256x256xf32>, vector<256x384xf32>, vector<256x384xf32> -> vector<256x384xf32>
    %c0_3 = arith.constant 0 : index
    %c0_4 = arith.constant 0 : index
    %3 = vector.load %arg3[%c0_3, %c0_4] : memref<256x384xf32, #tpu.memory_space<vmem>>, vector<256x384xf32>
    tpu.vector_store %arg3[%c0_3, %c0_4], %2 {strides = array<i32>} : memref<256x384xf32, #tpu.memory_space<vmem>>, vector<256x384xf32>,
    return
  }
  func.func @transform_0(%arg0: i32) -> (i32, i32) {
    %c0_i32 = arith.constant 0 : i32
    %c0_i32_0 = arith.constant 0 : i32
    return %arg0, %c0_i32 : i32, i32
  }
  func.func @transform_1(%arg0: i32) -> (i32, i32) {
    %c0_i32 = arith.constant 0 : i32
    %c0_i32_0 = arith.constant 0 : i32
    %c0_i32_1 = arith.constant 0 : i32
    return %c0_i32, %c0_i32_0 : i32, i32
  }
  func.func @transform_2(%arg0: i32) -> (i32, i32) {
    %c0_i32 = arith.constant 0 : i32
    %c0_i32_0 = arith.constant 0 : i32
    return %arg0, %c0_i32 : i32, i32
  }
}

</mosaic_0001>

<bundles_post_ra>
// kernel: tpu_custom_call.1
= control target key start
LH: loop header
LB: loop body
LE: loop exit
PB: predicated region body
PF: predicated region fallthrough
CT: control target
= control target key end

     0   :  { %7 = vsyncpa [#allocation3], 0  ;;  %s1069_s0 = inlined_call_operand.hbm [shape: f32[256,256], index: 0, kind: input, shape index: {}]   ;;  %s1070_s1 = inlined_call_operand.hbm [shape: f32[256,384], index: 1, kind: input, shape index: {}]   ;;  %s1071_s2 = inlined_call_operand.hbm [shape: f32[256,384], index: 2, kind: output, shape index: {}]  }
   0x1   :  { %8 = vsyncpa [#allocation6], 0 }
   0x2   :  { %9 = vsyncpa [#allocation4], 0  ;;  %s988_s9 = smov [#allocation2]   ;;  %s916_s13 = scalar_lea.hbm %s1069_s0, 8192 }
   0x3   :  { %s15_s10 = sshll.u32 %s988_s9, 4  ;;  %p917_p0 = scmp.ne.s32.totalorder %s1069_s0, %s916_s13  ;;  %s16_s10 = int_to_ptr.vmem [resolvable:$true] %s15_s10 }
   0x4   :  { %p920_p1 = scmp.lt.u32.totalorder %s916_s13, %s1069_s0 }
   0x6   :  { %p922_p2 = pnand %p920_p1, %p917_p0 }
   0x8   :  { %925 = shalt.err (!%p922_p2)
}
   0x9   :  { %s926_s18 = scalar_lea.vmem %s16_s10, 8192  ;;  %p931_p4 = scmp.lt.s32.totalorder %s16_s10, %s16_s10 }
   0xa   :  { %p927_p3 = scmp.ne.s32.totalorder %s16_s10, %s926_s18  ;;  %p932_p5 = scmp.lt.s32.totalorder %s926_s18, %s926_s18 }
   0xc   :  { %p933_p6 = por %p932_p5, %p931_p4 }
   0xe   :  { %p934_p7 = pnand %p933_p6, %p927_p3 }
  0x10   :  { %937 = shalt.err (!%p934_p7)
}
  0x11   :  { %s989_s19 = smov 256   ;;  %s990_s20 = smov 16  }
  0x12   :  { %21 = dma.hbm_to_vmem [thread:$0]  %s1069_s0, 8192, %s16_s10, [#allocation3], %s989_s19, %s989_s19, %s990_s20  }
  0x13   :  { %s991_s23 = smov [#allocation5]   ;;  %s938_s27 = scalar_lea.hbm %s1070_s1, 12288 }
  0x14   :  { %s27_s24 = sshll.u32 %s991_s23, 4  ;;  %p939_p8 = scmp.ne.s32.totalorder %s1070_s1, %s938_s27  ;;  %s28_s24 = int_to_ptr.vmem [resolvable:$true] %s27_s24 }
  0x15   :  { %p942_p9 = scmp.lt.u32.totalorder %s938_s27, %s1070_s1 }
  0x17   :  { %p944_p10 = pnand %p942_p9, %p939_p8 }
  0x19   :  { %947 = shalt.err (!%p944_p10)
}
  0x1a   :  { %s948_s4 = scalar_lea.vmem %s28_s24, 12288  ;;  %p953_p12 = scmp.lt.s32.totalorder %s28_s24, %s28_s24 }
  0x1b   :  { %p949_p11 = scmp.ne.s32.totalorder %s28_s24, %s948_s4  ;;  %p954_p13 = scmp.lt.s32.totalorder %s948_s4, %s948_s4 }
  0x1d   :  { %p955_p0 = por %p954_p13, %p953_p12 }
  0x1f   :  { %p956_p1 = pnand %p955_p0, %p949_p11 }
  0x21   :  { %959 = shalt.err (!%p956_p1)
}
  0x22   :  { %s992_s0 = smov 384   ;;  %s993_s5 = smov 24  }
  0x23   :  { %33 = dma.hbm_to_vmem [thread:$0]  %s1070_s1, 12288, %s28_s24, [#allocation6], %s992_s0, %s992_s0, %s993_s5  }
  0x24   :  { %982 = dma.done.wait [#allocation3], 8192  }
  0x25   :  { %983 = vsyncadd [#allocation3], 4294959104 }
  0x26   :  { %984 = dma.done.wait [#allocation6], 12288  }
  0x27   :  { %985 = vsyncadd [#allocation6], 4294955008  ;;  %v994_v0 = vmov 0.0|0.0   ;;  %v105_v1 = vld [vmem:[#allocation5 + $0x8] sm:$0xff]  ;;  %v108_v2 = vld [vmem:[#allocation5 + $0x20] sm:$0xff]  ;;  %s995_s1 = smov [#allocation7]  }
  0x28   :  { %860 = vmatprep.subr.bf16.mxu1 %v994_v0  ;;  %v104_v3 = vld [vmem:[#allocation5] sm:$0xff]  ;;  %v796_v4 = vpack.c.bf16 %v108_v2, %v105_v1  ;;  %v107_v5 = vld [vmem:[#allocation5 + $0x18] sm:$0xff]  ;;  %v106_v6 = vld [vmem:[#allocation5 + $0x10] sm:$0xff]  ;;  %s783_s8 = sshll.u32 %s995_s1, 4  ;;  %s784_s8 = int_to_ptr.vmem [resolvable:$true] %s783_s8 }
  0x29   :  { %v109_v7 = vld [vmem:[#allocation5 + $0x28] sm:$0xff]  ;;  %v798_v8 = vpack.c.bf16 %v107_v5, %v104_v3  ;;  %v111_v10 = vld [vmem:[#allocation5 + $0x38] sm:$0xff]  ;;  %v114_v11 = vld [vmem:[#allocation5 + $0x50] sm:$0xff]  ;;  %s960_s9 = scalar_lea.vmem %s784_s8, 12288  ;;  %p965_p3 = scmp.lt.s32.totalorder %s784_s8, %s784_s8 }
  0x2a   :  { %v861_v9 = vpack.c.bf16 %v109_v7, %v106_v6  ;;  %v110_v12 = vld [vmem:[#allocation5 + $0x30] sm:$0xff]  ;;  %797 = vmatprep.subr.bf16.mxu0 %v796_v4  ;;  %v800_v13 = vpack.c.bf16 %v114_v11, %v111_v10  ;;  %v113_v14 = vld [vmem:[#allocation5 + $0x48] sm:$0xff]  ;;  %v112_v15 = vld [vmem:[#allocation5 + $0x40] sm:$0xff]  ;;  %p961_p2 = scmp.ne.s32.totalorder %s784_s8, %s960_s9  ;;  %p966_p4 = scmp.lt.s32.totalorder %s960_s9, %s960_s9 }
  0x2b   :  { %v115_v16 = vld [vmem:[#allocation5 + $0x58] sm:$0xff]  ;;  %799 = vmatpush1.bf16.msra.mxu0 %v798_v8  ;;  %v802_v17 = vpack.c.bf16 %v113_v14, %v110_v12  ;;  %v117_v19 = vld [vmem:[#allocation5 + $0x68] sm:$0xff]  ;;  %v120_v20 = vld [vmem:[#allocation5 + $0x80] sm:$0xff] }
  0x2c   :  { %862 = vmatpush1.bf16.msra.mxu1 %v861_v9  ;;  %v864_v18 = vpack.c.bf16 %v115_v16, %v112_v15  ;;  %v116_v21 = vld [vmem:[#allocation5 + $0x60] sm:$0xff]  ;;  %801 = vmatprep.subr.bf16.mxu0 %v800_v13  ;;  %v804_v22 = vpack.c.bf16 %v120_v20, %v117_v19  ;;  %v119_v23 = vld [vmem:[#allocation5 + $0x78] sm:$0xff]  ;;  %v118_v24 = vld [vmem:[#allocation5 + $0x70] sm:$0xff]  ;;  %p967_p5 = por %p966_p4, %p965_p3 }
  0x2d   :  { %863 = vmatprep.subr.bf16.mxu1 %v994_v0  ;;  %v121_v25 = vld [vmem:[#allocation5 + $0x88] sm:$0xff]  ;;  %v123_v26 = vld [vmem:[#allocation5 + $0x98] sm:$0xff]  ;;  %v126_v27 = vld [vmem:[#allocation5 + $0xb0] sm:$0xff]  ;;  %v806_v28 = vpack.c.bf16 %v119_v23, %v116_v21 }
  0x2e   :  { %v867_v29 = vpack.c.bf16 %v121_v25, %v118_v24  ;;  %v122_v30 = vld [vmem:[#allocation5 + $0x90] sm:$0xff]  ;;  %v808_v31 = vpack.c.bf16 %v126_v27, %v123_v26  ;;  %v125_v32 = vld [vmem:[#allocation5 + $0xa8] sm:$0xff]  ;;  %v124_v33 = vld [vmem:[#allocation5 + $0xa0] sm:$0xff]  ;;  %p968_p6 = pnand %p967_p5, %p961_p2 }
  0x2f   :  { %803 = vmatpush1.bf16.msra.mxu0 %v802_v17  ;;  %v127_v34 = vld [vmem:[#allocation5 + $0xb8] sm:$0xff]  ;;  %v129_v35 = vld [vmem:[#allocation5 + $0xc8] sm:$0xff]  ;;  %v132_v36 = vld [vmem:[#allocation5 + $0xe0] sm:$0xff]  ;;  %v810_v37 = vpack.c.bf16 %v125_v32, %v122_v30 }
  0x30   :  { %865 = vmatpush1.bf16.msra.mxu1 %v864_v18  ;;  %805 = vmatprep.subr.bf16.mxu0 %v804_v22  ;;  %v870_v38 = vpack.c.bf16 %v127_v34, %v124_v33  ;;  %v128_v39 = vld [vmem:[#allocation5 + $0xc0] sm:$0xff]  ;;  %v812_v40 = vpack.c.bf16 %v132_v36, %v129_v35  ;;  %v131_v41 = vld [vmem:[#allocation5 + $0xd8] sm:$0xff]  ;;  %v130_v42 = vld [vmem:[#allocation5 + $0xd0] sm:$0xff] }
  0x31   :  { %866 = vmatprep.subr.bf16.mxu1 %v994_v0  ;;  %v133_v43 = vld [vmem:[#allocation5 + $0xe8] sm:$0xff]  ;;  %v135_v44 = vld [vmem:[#allocation5 + $0xf8] sm:$0xff]  ;;  %v138_v45 = vld [vmem:[#allocation5 + $0x110] sm:$0xff]  ;;  %v814_v46 = vpack.c.bf16 %v131_v41, %v128_v39 }
  0x32   :  { %v873_v47 = vpack.c.bf16 %v133_v43, %v130_v42  ;;  %v134_v48 = vld [vmem:[#allocation5 + $0xf0] sm:$0xff]  ;;  %v816_v49 = vpack.c.bf16 %v138_v45, %v135_v44  ;;  %v137_v50 = vld [vmem:[#allocation5 + $0x108] sm:$0xff]  ;;  %v136_v51 = vld [vmem:[#allocation5 + $0x100] sm:$0xff] }
  0x33   :  { %807 = vmatpush1.bf16.msra.mxu0 %v806_v28  ;;  %v139_v52 = vld [vmem:[#allocation5 + $0x118] sm:$0xff]  ;;  %v141_v53 = vld [vmem:[#allocation5 + $0x128] sm:$0xff]  ;;  %v144_v54 = vld [vmem:[#allocation5 + $0x140] sm:$0xff]  ;;  %v818_v55 = vpack.c.bf16 %v137_v50, %v134_v48 }
  0x34   :  { %868 = vmatpush1.bf16.msra.mxu1 %v867_v29  ;;  %809 = vmatprep.subr.bf16.mxu0 %v808_v31  ;;  %v876_v56 = vpack.c.bf16 %v139_v52, %v136_v51  ;;  %v140_v57 = vld [vmem:[#allocation5 + $0x120] sm:$0xff]  ;;  %v820_v58 = vpack.c.bf16 %v144_v54, %v141_v53  ;;  %v143_v59 = vld [vmem:[#allocation5 + $0x138] sm:$0xff]  ;;  %v142_v60 = vld [vmem:[#allocation5 + $0x130] sm:$0xff] }
  0x35   :  { %869 = vmatprep.subr.bf16.mxu1 %v994_v0  ;;  %v145_v61 = vld [vmem:[#allocation5 + $0x148] sm:$0xff]  ;;  %v147_v62 = vld [vmem:[#allocation5 + $0x158] sm:$0xff]  ;;  %v150_v63 = vld [vmem:[#allocation5 + $0x170] sm:$0xff]  ;;  %v822_v1 = vpack.c.bf16 %v143_v59, %v140_v57 }
  0x36   :  { %v879_v2 = vpack.c.bf16 %v145_v61, %v142_v60  ;;  %v146_v3 = vld [vmem:[#allocation5 + $0x150] sm:$0xff]  ;;  %v824_v4 = vpack.c.bf16 %v150_v63, %v147_v62  ;;  %v149_v5 = vld [vmem:[#allocation5 + $0x168] sm:$0xff]  ;;  %v148_v6 = vld [vmem:[#allocation5 + $0x160] sm:$0xff] }
  0x37   :  { %811 = vmatpush1.bf16.msra.mxu0 %v810_v37  ;;  %v151_v7 = vld [vmem:[#allocation5 + $0x178] sm:$0xff]  ;;  %v153_v8 = vld [vmem:[#allocation5 + $0x188] sm:$0xff]  ;;  %v156_v9 = vld [vmem:[#allocation5 + $0x1a0] sm:$0xff]  ;;  %v826_v10 = vpack.c.bf16 %v149_v5, %v146_v3 }
  0x38   :  { %871 = vmatpush1.bf16.msra.mxu1 %v870_v38  ;;  %813 = vmatprep.subr.bf16.mxu0 %v812_v40  ;;  %v882_v11 = vpack.c.bf16 %v151_v7, %v148_v6  ;;  %v152_v12 = vld [vmem:[#allocation5 + $0x180] sm:$0xff]  ;;  %v828_v13 = vpack.c.bf16 %v156_v9, %v153_v8  ;;  %v155_v14 = vld [vmem:[#allocation5 + $0x198] sm:$0xff]  ;;  %v154_v15 = vld [vmem:[#allocation5 + $0x190] sm:$0xff] }
  0x39   :  { %872 = vmatprep.subr.bf16.mxu1 %v994_v0  ;;  %v157_v16 = vld [vmem:[#allocation5 + $0x1a8] sm:$0xff]  ;;  %v159_v17 = vld [vmem:[#allocation5 + $0x1b8] sm:$0xff]  ;;  %v162_v18 = vld [vmem:[#allocation5 + $0x1d0] sm:$0xff]  ;;  %v830_v19 = vpack.c.bf16 %v155_v14, %v152_v12 }
  0x3a   :  { %v885_v20 = vpack.c.bf16 %v157_v16, %v154_v15  ;;  %v158_v21 = vld [vmem:[#allocation5 + $0x1b0] sm:$0xff]  ;;  %v41_v22 = vld [vmem:[#allocation2 + $0x8] sm:$0xff]  ;;  %v832_v23 = vpack.c.bf16 %v162_v18, %v159_v17  ;;  %v160_v25 = vld [vmem:[#allocation5 + $0x1c0] sm:$0xff] }
  0x3b   :  { %815 = vmatpush1.bf16.msra.mxu0 %v814_v46  ;;  %v161_v24 = vld [vmem:[#allocation5 + $0x1c8] sm:$0xff]  ;;  %v163_v26 = vld [vmem:[#allocation5 + $0x1d8] sm:$0xff]  ;;  %v168_v28 = vld [vmem:[#allocation5 + $0x200] sm:$0xff]  ;;  %264 = vmatprep.mubr.f32.mxu0 %v41_v22 }
  0x3c   :  { %874 = vmatpush1.bf16.msra.mxu1 %v873_v47  ;;  %817 = vmatprep.subr.bf16.mxu0 %v816_v49  ;;  %v165_v27 = vld [vmem:[#allocation5 + $0x1e8] sm:$0xff]  ;;  %v834_v29 = vpack.c.bf16 %v161_v24, %v158_v21  ;;  %v888_v30 = vpack.c.bf16 %v163_v26, %v160_v25  ;;  %v164_v31 = vld [vmem:[#allocation5 + $0x1e0] sm:$0xff]  ;;  %v167_v33 = vld [vmem:[#allocation5 + $0x1f8] sm:$0xff] }
  0x3d   :  { %875 = vmatprep.subr.bf16.mxu1 %v994_v0  ;;  %521 = vmatprep.mubr.f32.mxu1 %v41_v22  ;;  %v836_v32 = vpack.c.bf16 %v168_v28, %v165_v27  ;;  %v166_v34 = vld [vmem:[#allocation5 + $0x1f0] sm:$0xff]  ;;  %v169_v35 = vld [vmem:[#allocation5 + $0x208] sm:$0xff]  ;;  %v171_v36 = vld [vmem:[#allocation5 + $0x218] sm:$0xff]  ;;  %v838_v38 = vpack.c.bf16 %v167_v33, %v164_v31 }
  0x3e   :  { %v174_v37 = vld [vmem:[#allocation5 + $0x230] sm:$0xff]  ;;  %v891_v39 = vpack.c.bf16 %v169_v35, %v166_v34  ;;  %v173_v42 = vld [vmem:[#allocation5 + $0x228] sm:$0xff]  ;;  %v172_v43 = vld [vmem:[#allocation5 + $0x220] sm:$0xff] }
  0x3f   :  { %819 = vmatpush1.bf16.msra.mxu0 %v818_v55  ;;  %v170_v40 = vld [vmem:[#allocation5 + $0x210] sm:$0xff]  ;;  %v840_v41 = vpack.c.bf16 %v174_v37, %v171_v36  ;;  %v175_v44 = vld [vmem:[#allocation5 + $0x238] sm:$0xff]  ;;  %v177_v45 = vld [vmem:[#allocation5 + $0x248] sm:$0xff] }
  0x40   :  { %877 = vmatpush1.bf16.msra.mxu1 %v876_v56  ;;  %821 = vmatprep.subr.bf16.mxu0 %v820_v58  ;;  %v180_v46 = vld [vmem:[#allocation5 + $0x260] sm:$0xff]  ;;  %v842_v47 = vpack.c.bf16 %v173_v42, %v170_v40  ;;  %v894_v48 = vpack.c.bf16 %v175_v44, %v172_v43  ;;  %v179_v51 = vld [vmem:[#allocation5 + $0x258] sm:$0xff]  ;;  %v178_v52 = vld [vmem:[#allocation5 + $0x250] sm:$0xff] }
  0x41   :  { %878 = vmatprep.subr.bf16.mxu1 %v994_v0  ;;  %v176_v49 = vld [vmem:[#allocation5 + $0x240] sm:$0xff]  ;;  %v844_v50 = vpack.c.bf16 %v180_v46, %v177_v45  ;;  %v181_v53 = vld [vmem:[#allocation5 + $0x268] sm:$0xff]  ;;  %v183_v54 = vld [vmem:[#allocation5 + $0x278] sm:$0xff] }
  0x42   :  { %v186_v55 = vld [vmem:[#allocation5 + $0x290] sm:$0xff]  ;;  %v846_v56 = vpack.c.bf16 %v179_v51, %v176_v49  ;;  %v897_v57 = vpack.c.bf16 %v181_v53, %v178_v52  ;;  %v185_v60 = vld [vmem:[#allocation5 + $0x288] sm:$0xff]  ;;  %v184_v61 = vld [vmem:[#allocation5 + $0x280] sm:$0xff] }
  0x43   :  { %823 = vmatpush1.bf16.msra.mxu0 %v822_v1  ;;  %v182_v58 = vld [vmem:[#allocation5 + $0x270] sm:$0xff]  ;;  %v848_v59 = vpack.c.bf16 %v186_v55, %v183_v54  ;;  %v187_v62 = vld [vmem:[#allocation5 + $0x298] sm:$0xff]  ;;  %v189_v63 = vld [vmem:[#allocation5 + $0x2a8] sm:$0xff] }
  0x44   :  { %880 = vmatpush1.bf16.msra.mxu1 %v879_v2  ;;  %825 = vmatprep.subr.bf16.mxu0 %v824_v4  ;;  %v192_v1 = vld [vmem:[#allocation5 + $0x2c0] sm:$0xff]  ;;  %v850_v2 = vpack.c.bf16 %v185_v60, %v182_v58  ;;  %v900_v3 = vpack.c.bf16 %v187_v62, %v184_v61  ;;  %v191_v6 = vld [vmem:[#allocation5 + $0x2b8] sm:$0xff]  ;;  %v190_v7 = vld [vmem:[#allocation5 + $0x2b0] sm:$0xff] }
  0x45   :  { %881 = vmatprep.subr.bf16.mxu1 %v994_v0  ;;  %v188_v4 = vld [vmem:[#allocation5 + $0x2a0] sm:$0xff]  ;;  %v852_v5 = vpack.c.bf16 %v192_v1, %v189_v63  ;;  %v193_v8 = vld [vmem:[#allocation5 + $0x2c8] sm:$0xff]  ;;  %v195_v9 = vld [vmem:[#allocation5 + $0x2d8] sm:$0xff] }
  0x46   :  { %v903_v12 = vpack.c.bf16 %v193_v8, %v190_v7  ;;  %v197_v15 = vld [vmem:[#allocation5 + $0x2e8] sm:$0xff]  ;;  %v196_v16 = vld [vmem:[#allocation5 + $0x2e0] sm:$0xff]  ;;  %v199_v17 = vld [vmem:[#allocation5 + $0x2f8] sm:$0xff] }
  0x47   :  { %827 = vmatpush1.bf16.msra.mxu0 %v826_v10  ;;  %v198_v10 = vld [vmem:[#allocation5 + $0x2f0] sm:$0xff]  ;;  %v43_v21 = vld [vmem:[#allocation2 + $0x18] sm:$0xff]  ;;  %v44_v24 = vld [vmem:[#allocation2 + $0x20] sm:$0xff] }
  0x48   :  { %883 = vmatpush1.bf16.msra.mxu1 %v882_v11  ;;  %829 = vmatprep.subr.bf16.mxu0 %v828_v13  ;;  %v854_v11 = vpack.c.bf16 %v191_v6, %v188_v4  ;;  %v194_v13 = vld [vmem:[#allocation5 + $0x2d0] sm:$0xff]  ;;  %v856_v14 = vpack.c.bf16 %v198_v10, %v195_v9  ;;  %v47_v25 = vld [vmem:[#allocation2 + $0x38] sm:$0xff]  ;;  %v49_v26 = vld [vmem:[#allocation2 + $0x48] sm:$0xff] }
  0x49   :  { %884 = vmatprep.subr.bf16.mxu1 %v994_v0  ;;  %v858_v18 = vpack.c.bf16 %v197_v15, %v194_v13  ;;  %v42_v22 = vld [vmem:[#allocation2 + $0x10] sm:$0xff]  ;;  %v48_v27 = vld [vmem:[#allocation2 + $0x40] sm:$0xff]  ;;  %v51_v28 = vld [vmem:[#allocation2 + $0x58] sm:$0xff] }
  0x4a   :  { %v52_v31 = vld [vmem:[#allocation2 + $0x60] sm:$0xff]  ;;  %v54_v33 = vld [vmem:[#allocation2 + $0x70] sm:$0xff]  ;;  %v57_v34 = vld [vmem:[#allocation2 + $0x88] sm:$0xff] }
  0x4b   :  { %831 = vmatpush1.bf16.msra.mxu0 %v830_v19  ;;  %v906_v19 = vpack.c.bf16 %v199_v17, %v196_v16  ;;  %v56_v35 = vld [vmem:[#allocation2 + $0x80] sm:$0xff]  ;;  %v59_v36 = vld [vmem:[#allocation2 + $0x98] sm:$0xff]  ;;  %v58_v37 = vld [vmem:[#allocation2 + $0x90] sm:$0xff] }
  0x4c   :  { %886 = vmatpush1.bf16.msra.mxu1 %v885_v20  ;;  %833 = vmatprep.subr.bf16.mxu0 %v832_v23  ;;  %v40_v20 = vld [vmem:[#allocation2] sm:$0xff]  ;;  %v45_v23 = vld [vmem:[#allocation2 + $0x28] sm:$0xff]  ;;  %v63_v40 = vld [vmem:[#allocation2 + $0xb8] sm:$0xff] }
  0x4d   :  { %887 = vmatprep.subr.bf16.mxu1 %v994_v0  ;;  %v65_v42 = vld [vmem:[#allocation2 + $0xc8] sm:$0xff]  ;;  %v64_v43 = vld [vmem:[#allocation2 + $0xc0] sm:$0xff]  ;;  %v67_v44 = vld [vmem:[#allocation2 + $0xd8] sm:$0xff] }
  0x4e   :  { %v66_v45 = vld [vmem:[#allocation2 + $0xd0] sm:$0xff]  ;;  %v69_v46 = vld [vmem:[#allocation2 + $0xe8] sm:$0xff]  ;;  %v72_v51 = vld [vmem:[#allocation2 + $0x100] sm:$0xff] }
  0x4f   :  { %835 = vmatpush1.bf16.msra.mxu0 %v834_v29  ;;  %v50_v29 = vld [vmem:[#allocation2 + $0x50] sm:$0xff]  ;;  %v75_v52 = vld [vmem:[#allocation2 + $0x118] sm:$0xff]  ;;  %v77_v54 = vld [vmem:[#allocation2 + $0x128] sm:$0xff] }
  0x50   :  { %889 = vmatpush1.bf16.msra.mxu1 %v888_v30  ;;  %837 = vmatprep.subr.bf16.mxu0 %v836_v32  ;;  %v53_v30 = vld [vmem:[#allocation2 + $0x68] sm:$0xff]  ;;  %v55_v32 = vld [vmem:[#allocation2 + $0x78] sm:$0xff]  ;;  %v70_v49 = vld [vmem:[#allocation2 + $0xf0] sm:$0xff] }
  0x51   :  { %890 = vmatprep.subr.bf16.mxu1 %v994_v0  ;;  %v74_v53 = vld [vmem:[#allocation2 + $0x110] sm:$0xff]  ;;  %v76_v55 = vld [vmem:[#allocation2 + $0x120] sm:$0xff]  ;;  %v81_v58 = vld [vmem:[#allocation2 + $0x148] sm:$0xff] }
  0x52   :  { %v83_v60 = vld [vmem:[#allocation2 + $0x158] sm:$0xff]  ;;  %v82_v61 = vld [vmem:[#allocation2 + $0x150] sm:$0xff]  ;;  %v85_v62 = vld [vmem:[#allocation2 + $0x168] sm:$0xff] }
  0x53   :  { %839 = vmatpush1.bf16.msra.mxu0 %v838_v38  ;;  %v61_v38 = vld [vmem:[#allocation2 + $0xa8] sm:$0xff]  ;;  %v84_v63 = vld [vmem:[#allocation2 + $0x160] sm:$0xff]  ;;  %v87_v1 = vld [vmem:[#allocation2 + $0x178] sm:$0xff] }
  0x54   :  { %892 = vmatpush1.bf16.msra.mxu1 %v891_v39  ;;  %841 = vmatprep.subr.bf16.mxu0 %v840_v41  ;;  %v60_v39 = vld [vmem:[#allocation2 + $0xa0] sm:$0xff]  ;;  %v62_v41 = vld [vmem:[#allocation2 + $0xb0] sm:$0xff]  ;;  %v93_v7 = vld [vmem:[#allocation2 + $0x1a8] sm:$0xff] }
  0x55   :  { %893 = vmatprep.subr.bf16.mxu1 %v994_v0  ;;  %v88_v4 = vld [vmem:[#allocation2 + $0x180] sm:$0xff]  ;;  %v90_v6 = vld [vmem:[#allocation2 + $0x190] sm:$0xff]  ;;  %v95_v9 = vld [vmem:[#allocation2 + $0x1b8] sm:$0xff] }
  0x56   :  { %v92_v8 = vld [vmem:[#allocation2 + $0x1a0] sm:$0xff]  ;;  %v94_v10 = vld [vmem:[#allocation2 + $0x1b0] sm:$0xff]  ;;  %v99_v13 = vld [vmem:[#allocation2 + $0x1d8] sm:$0xff] }
  0x57   :  { %843 = vmatpush1.bf16.msra.mxu0 %v842_v47  ;;  %v68_v47 = vld [vmem:[#allocation2 + $0xe0] sm:$0xff]  ;;  %v101_v15 = vld [vmem:[#allocation2 + $0x1e8] sm:$0xff]  ;;  %v103_v17 = vld [vmem:[#allocation2 + $0x1f8] sm:$0xff] }
  0x58   :  { %895 = vmatpush1.bf16.msra.mxu1 %v894_v48  ;;  %845 = vmatprep.subr.bf16.mxu0 %v844_v50  ;;  %v71_v48 = vld [vmem:[#allocation2 + $0xf8] sm:$0xff]  ;;  %v73_v50 = vld [vmem:[#allocation2 + $0x108] sm:$0xff]  ;;  %v100_v16 = vld [vmem:[#allocation2 + $0x1e0] sm:$0xff] }
  0x59   :  { %896 = vmatprep.subr.bf16.mxu1 %v994_v0 }
  0x5b   :  { %847 = vmatpush1.bf16.msra.mxu0 %v846_v56  ;;  %v79_v56 = vld [vmem:[#allocation2 + $0x138] sm:$0xff] }
  0x5c   :  { %898 = vmatpush1.bf16.msra.mxu1 %v897_v57  ;;  %849 = vmatprep.subr.bf16.mxu0 %v848_v59  ;;  %v78_v57 = vld [vmem:[#allocation2 + $0x130] sm:$0xff]  ;;  %v80_v59 = vld [vmem:[#allocation2 + $0x140] sm:$0xff] }
  0x5d   :  { %899 = vmatprep.subr.bf16.mxu1 %v994_v0 }
  0x5f   :  { %851 = vmatpush1.bf16.msra.mxu0 %v850_v2  ;;  %v86_v2 = vld [vmem:[#allocation2 + $0x170] sm:$0xff] }
  0x60   :  { %901 = vmatpush1.bf16.msra.mxu1 %v900_v3  ;;  %853 = vmatprep.subr.bf16.mxu0 %v852_v5  ;;  %v89_v3 = vld [vmem:[#allocation2 + $0x188] sm:$0xff]  ;;  %v91_v5 = vld [vmem:[#allocation2 + $0x198] sm:$0xff] }
  0x61   :  { %902 = vmatprep.subr.bf16.mxu1 %v994_v0 }
  0x63   :  { %855 = vmatpush1.bf16.msra.mxu0 %v854_v11  ;;  %v97_v11 = vld [vmem:[#allocation2 + $0x1c8] sm:$0xff] }
  0x64   :  { %904 = vmatpush1.bf16.msra.mxu1 %v903_v12  ;;  %857 = vmatprep.subr.bf16.mxu0 %v856_v14  ;;  %v96_v12 = vld [vmem:[#allocation2 + $0x1c0] sm:$0xff]  ;;  %v98_v14 = vld [vmem:[#allocation2 + $0x1d0] sm:$0xff] }
  0x65   :  { %905 = vmatprep.subr.bf16.mxu1 %v994_v0  ;;  %v46_v0 = vld [vmem:[#allocation2 + $0x30] sm:$0xff] }
  0x67   :  { %859 = vmatpush1.bf16.msra.mxu0 %v858_v18  ;;  %v102_v18 = vld [vmem:[#allocation2 + $0x1f0] sm:$0xff] }
  0x68   :  { %907 = vmatpush1.bf16.msra.mxu1 %v906_v19 }
  0x6a   :  { %265 = vmatmul.mubr.f32.vlgmr.msra.gmra.mrb[0].mxu0 %v40_v20 }
  0x6b   :  { %522 = vmatmul.mubr.f32.vlgmr.msra.gmra.mrb[0].mxu1 %v40_v20  ;;  %270 = vmatprep.mubr.f32.mxu0 %v43_v21 }
  0x6c   :  { %526 = vmatprep.mubr.f32.mxu1 %v43_v21 }
  0x6e   :  { %271 = vmatmul.mubr.f32.gmra.mrb[2].mxu0 %v42_v22 }
  0x6f   :  { %527 = vmatmul.mubr.f32.gmra.mrb[2].mxu1 %v42_v22  ;;  %276 = vmatprep.mubr.f32.mxu0 %v45_v23 }
  0x70   :  { %531 = vmatprep.mubr.f32.mxu1 %v45_v23 }
  0x72   :  { %277 = vmatmul.mubr.f32.gmra.mrb[4].mxu0 %v44_v24 }
  0x73   :  { %532 = vmatmul.mubr.f32.gmra.mrb[4].mxu1 %v44_v24  ;;  %282 = vmatprep.mubr.f32.mxu0 %v47_v25 }
  0x74   :  { %536 = vmatprep.mubr.f32.mxu1 %v47_v25 }
  0x76   :  { %283 = vmatmul.mubr.f32.gmra.mrb[6].mxu0 %v46_v0 }
  0x77   :  { %537 = vmatmul.mubr.f32.gmra.mrb[6].mxu1 %v46_v0  ;;  %288 = vmatprep.mubr.f32.mxu0 %v49_v26 }
  0x78   :  { %541 = vmatprep.mubr.f32.mxu1 %v49_v26 }
  0x7a   :  { %289 = vmatmul.mubr.f32.gmra.mrb[8].mxu0 %v48_v27 }
  0x7b   :  { %542 = vmatmul.mubr.f32.gmra.mrb[8].mxu1 %v48_v27  ;;  %294 = vmatprep.mubr.f32.mxu0 %v51_v28 }
  0x7c   :  { %546 = vmatprep.mubr.f32.mxu1 %v51_v28 }
  0x7e   :  { %295 = vmatmul.mubr.f32.gmra.mrb[10].mxu0 %v50_v29 }
  0x7f   :  { %547 = vmatmul.mubr.f32.gmra.mrb[10].mxu1 %v50_v29  ;;  %300 = vmatprep.mubr.f32.mxu0 %v53_v30 }
  0x80   :  { %551 = vmatprep.mubr.f32.mxu1 %v53_v30 }
  0x82   :  { %301 = vmatmul.mubr.f32.gmra.mrb[12].mxu0 %v52_v31 }
  0x83   :  { %552 = vmatmul.mubr.f32.gmra.mrb[12].mxu1 %v52_v31  ;;  %306 = vmatprep.mubr.f32.mxu0 %v55_v32 }
  0x84   :  { %556 = vmatprep.mubr.f32.mxu1 %v55_v32 }
  0x86   :  { %307 = vmatmul.mubr.f32.gmra.mrb[14].mxu0 %v54_v33 }
  0x87   :  { %557 = vmatmul.mubr.f32.gmra.mrb[14].mxu1 %v54_v33  ;;  %312 = vmatprep.mubr.f32.mxu0 %v57_v34 }
  0x88   :  { %561 = vmatprep.mubr.f32.mxu1 %v57_v34 }
  0x8a   :  { %313 = vmatmul.mubr.f32.gmra.mrb[16].mxu0 %v56_v35 }
  0x8b   :  { %562 = vmatmul.mubr.f32.gmra.mrb[16].mxu1 %v56_v35  ;;  %318 = vmatprep.mubr.f32.mxu0 %v59_v36 }
  0x8c   :  { %566 = vmatprep.mubr.f32.mxu1 %v59_v36 }
  0x8e   :  { %319 = vmatmul.mubr.f32.gmra.mrb[18].mxu0 %v58_v37 }
  0x8f   :  { %567 = vmatmul.mubr.f32.gmra.mrb[18].mxu1 %v58_v37  ;;  %324 = vmatprep.mubr.f32.mxu0 %v61_v38 }
  0x90   :  { %571 = vmatprep.mubr.f32.mxu1 %v61_v38 }
  0x92   :  { %325 = vmatmul.mubr.f32.gmra.mrb[20].mxu0 %v60_v39 }
  0x93   :  { %572 = vmatmul.mubr.f32.gmra.mrb[20].mxu1 %v60_v39  ;;  %330 = vmatprep.mubr.f32.mxu0 %v63_v40 }
  0x94   :  { %576 = vmatprep.mubr.f32.mxu1 %v63_v40 }
  0x96   :  { %331 = vmatmul.mubr.f32.gmra.mrb[22].mxu0 %v62_v41 }
  0x97   :  { %577 = vmatmul.mubr.f32.gmra.mrb[22].mxu1 %v62_v41  ;;  %336 = vmatprep.mubr.f32.mxu0 %v65_v42 }
  0x98   :  { %581 = vmatprep.mubr.f32.mxu1 %v65_v42 }
  0x9a   :  { %337 = vmatmul.mubr.f32.gmra.mrb[24].mxu0 %v64_v43 }
  0x9b   :  { %582 = vmatmul.mubr.f32.gmra.mrb[24].mxu1 %v64_v43  ;;  %342 = vmatprep.mubr.f32.mxu0 %v67_v44 }
  0x9c   :  { %586 = vmatprep.mubr.f32.mxu1 %v67_v44 }
  0x9e   :  { %343 = vmatmul.mubr.f32.gmra.mrb[26].mxu0 %v66_v45 }
  0x9f   :  { %587 = vmatmul.mubr.f32.gmra.mrb[26].mxu1 %v66_v45  ;;  %348 = vmatprep.mubr.f32.mxu0 %v69_v46 }
  0xa0   :  { %591 = vmatprep.mubr.f32.mxu1 %v69_v46 }
  0xa2   :  { %349 = vmatmul.mubr.f32.gmra.mrb[28].mxu0 %v68_v47 }
  0xa3   :  { %592 = vmatmul.mubr.f32.gmra.mrb[28].mxu1 %v68_v47  ;;  %354 = vmatprep.mubr.f32.mxu0 %v71_v48 }
  0xa4   :  { %596 = vmatprep.mubr.f32.mxu1 %v71_v48 }
  0xa6   :  { %355 = vmatmul.mubr.f32.gmra.mrb[30].mxu0 %v70_v49 }
  0xa7   :  { %597 = vmatmul.mubr.f32.gmra.mrb[30].mxu1 %v70_v49  ;;  %360 = vmatprep.mubr.f32.mxu0 %v73_v50 }
  0xa8   :  { %601 = vmatprep.mubr.f32.mxu1 %v73_v50 }
  0xaa   :  { %361 = vmatmul.mubr.f32.gmra.mrb[32].mxu0 %v72_v51 }
  0xab   :  { %602 = vmatmul.mubr.f32.gmra.mrb[32].mxu1 %v72_v51  ;;  %366 = vmatprep.mubr.f32.mxu0 %v75_v52 }
  0xac   :  { %606 = vmatprep.mubr.f32.mxu1 %v75_v52 }
  0xae   :  { %367 = vmatmul.mubr.f32.gmra.mrb[34].mxu0 %v74_v53 }
  0xaf   :  { %607 = vmatmul.mubr.f32.gmra.mrb[34].mxu1 %v74_v53  ;;  %372 = vmatprep.mubr.f32.mxu0 %v77_v54 }
  0xb0   :  { %611 = vmatprep.mubr.f32.mxu1 %v77_v54 }
  0xb2   :  { %373 = vmatmul.mubr.f32.gmra.mrb[36].mxu0 %v76_v55 }
  0xb3   :  { %612 = vmatmul.mubr.f32.gmra.mrb[36].mxu1 %v76_v55  ;;  %378 = vmatprep.mubr.f32.mxu0 %v79_v56 }
  0xb4   :  { %616 = vmatprep.mubr.f32.mxu1 %v79_v56 }
  0xb6   :  { %379 = vmatmul.mubr.f32.gmra.mrb[38].mxu0 %v78_v57 }
  0xb7   :  { %617 = vmatmul.mubr.f32.gmra.mrb[38].mxu1 %v78_v57  ;;  %384 = vmatprep.mubr.f32.mxu0 %v81_v58 }
  0xb8   :  { %621 = vmatprep.mubr.f32.mxu1 %v81_v58 }
  0xba   :  { %385 = vmatmul.mubr.f32.gmra.mrb[40].mxu0 %v80_v59 }
  0xbb   :  { %622 = vmatmul.mubr.f32.gmra.mrb[40].mxu1 %v80_v59  ;;  %390 = vmatprep.mubr.f32.mxu0 %v83_v60 }
  0xbc   :  { %626 = vmatprep.mubr.f32.mxu1 %v83_v60 }
  0xbe   :  { %391 = vmatmul.mubr.f32.gmra.mrb[42].mxu0 %v82_v61 }
  0xbf   :  { %627 = vmatmul.mubr.f32.gmra.mrb[42].mxu1 %v82_v61  ;;  %396 = vmatprep.mubr.f32.mxu0 %v85_v62 }
  0xc0   :  { %631 = vmatprep.mubr.f32.mxu1 %v85_v62 }
  0xc2   :  { %397 = vmatmul.mubr.f32.gmra.mrb[44].mxu0 %v84_v63 }
  0xc3   :  { %632 = vmatmul.mubr.f32.gmra.mrb[44].mxu1 %v84_v63  ;;  %402 = vmatprep.mubr.f32.mxu0 %v87_v1 }
  0xc4   :  { %636 = vmatprep.mubr.f32.mxu1 %v87_v1 }
  0xc6   :  { %403 = vmatmul.mubr.f32.gmra.mrb[46].mxu0 %v86_v2 }
  0xc7   :  { %637 = vmatmul.mubr.f32.gmra.mrb[46].mxu1 %v86_v2  ;;  %408 = vmatprep.mubr.f32.mxu0 %v89_v3 }
  0xc8   :  { %641 = vmatprep.mubr.f32.mxu1 %v89_v3 }
  0xca   :  { %409 = vmatmul.mubr.f32.gmra.mrb[48].mxu0 %v88_v4 }
  0xcb   :  { %642 = vmatmul.mubr.f32.gmra.mrb[48].mxu1 %v88_v4  ;;  %414 = vmatprep.mubr.f32.mxu0 %v91_v5 }
  0xcc   :  { %646 = vmatprep.mubr.f32.mxu1 %v91_v5 }
  0xce   :  { %415 = vmatmul.mubr.f32.gmra.mrb[50].mxu0 %v90_v6 }
  0xcf   :  { %647 = vmatmul.mubr.f32.gmra.mrb[50].mxu1 %v90_v6  ;;  %420 = vmatprep.mubr.f32.mxu0 %v93_v7 }
  0xd0   :  { %651 = vmatprep.mubr.f32.mxu1 %v93_v7 }
  0xd2   :  { %421 = vmatmul.mubr.f32.gmra.mrb[52].mxu0 %v92_v8 }
  0xd3   :  { %652 = vmatmul.mubr.f32.gmra.mrb[52].mxu1 %v92_v8  ;;  %426 = vmatprep.mubr.f32.mxu0 %v95_v9 }
  0xd4   :  { %656 = vmatprep.mubr.f32.mxu1 %v95_v9 }
  0xd6   :  { %427 = vmatmul.mubr.f32.gmra.mrb[54].mxu0 %v94_v10 }
  0xd7   :  { %657 = vmatmul.mubr.f32.gmra.mrb[54].mxu1 %v94_v10  ;;  %432 = vmatprep.mubr.f32.mxu0 %v97_v11 }
  0xd8   :  { %661 = vmatprep.mubr.f32.mxu1 %v97_v11 }
  0xda   :  { %433 = vmatmul.mubr.f32.gmra.mrb[56].mxu0 %v96_v12 }
  0xdb   :  { %662 = vmatmul.mubr.f32.gmra.mrb[56].mxu1 %v96_v12  ;;  %438 = vmatprep.mubr.f32.mxu0 %v99_v13 }
  0xdc   :  { %666 = vmatprep.mubr.f32.mxu1 %v99_v13 }
  0xde   :  { %439 = vmatmul.mubr.f32.gmra.mrb[58].mxu0 %v98_v14 }
  0xdf   :  { %667 = vmatmul.mubr.f32.gmra.mrb[58].mxu1 %v98_v14  ;;  %444 = vmatprep.mubr.f32.mxu0 %v101_v15 }
  0xe0   :  { %671 = vmatprep.mubr.f32.mxu1 %v101_v15 }
  0xe2   :  { %445 = vmatmul.mubr.f32.gmra.mrb[60].mxu0 %v100_v16 }
  0xe3   :  { %672 = vmatmul.mubr.f32.gmra.mrb[60].mxu1 %v100_v16  ;;  %450 = vmatprep.mubr.f32.mxu0 %v103_v17 }
  0xe4   :  { %676 = vmatprep.mubr.f32.mxu1 %v103_v17 }
  0xe6   :  { %451 = vmatmul.mubr.f32.gmra.mrb[62].mxu0 %v102_v18 }
  0xe7   :  { %677 = vmatmul.mubr.f32.gmra.mrb[62].mxu1 %v102_v18 }
 0x13d   :  { %v266_v19 = vpop.f32.mrb[0].mxu0 }
 0x13e   :  { %v523_v20 = vpop.f32.mrb[0].mxu1  ;;  %682 = vst [vmem:[#allocation7] sm:$0xff] %v266_v19  ;;  %v268_v21 = vpop.f32.mrb[1].mxu0 }
 0x13f   :  { %684 = vst [vmem:[#allocation7 + $0x10] sm:$0xff] %v523_v20  ;;  %v525_v22 = vpop.f32.mrb[1].mxu1  ;;  %683 = vst [vmem:[#allocation7 + $0x8] sm:$0xff] %v268_v21 }
 0x141   :  { %v272_v23 = vpop.f32.mrb[2].mxu0 }
 0x142   :  { %v528_v24 = vpop.f32.mrb[2].mxu1  ;;  %685 = vst [vmem:[#allocation7 + $0x18] sm:$0xff] %v272_v23  ;;  %v274_v25 = vpop.f32.mrb[3].mxu0 }
 0x143   :  { %687 = vst [vmem:[#allocation7 + $0x28] sm:$0xff] %v528_v24  ;;  %v530_v0 = vpop.f32.mrb[3].mxu1  ;;  %686 = vst [vmem:[#allocation7 + $0x20] sm:$0xff] %v274_v25 }
 0x145   :  { %v278_v26 = vpop.f32.mrb[4].mxu0 }
 0x146   :  { %v533_v27 = vpop.f32.mrb[4].mxu1  ;;  %688 = vst [vmem:[#allocation7 + $0x30] sm:$0xff] %v278_v26  ;;  %v280_v28 = vpop.f32.mrb[5].mxu0 }
 0x147   :  { %690 = vst [vmem:[#allocation7 + $0x40] sm:$0xff] %v533_v27  ;;  %v535_v29 = vpop.f32.mrb[5].mxu1  ;;  %689 = vst [vmem:[#allocation7 + $0x38] sm:$0xff] %v280_v28 }
 0x149   :  { %v284_v30 = vpop.f32.mrb[6].mxu0 }
 0x14a   :  { %v538_v31 = vpop.f32.mrb[6].mxu1  ;;  %691 = vst [vmem:[#allocation7 + $0x48] sm:$0xff] %v284_v30  ;;  %v286_v32 = vpop.f32.mrb[7].mxu0 }
 0x14b   :  { %693 = vst [vmem:[#allocation7 + $0x58] sm:$0xff] %v538_v31  ;;  %v540_v33 = vpop.f32.mrb[7].mxu1  ;;  %692 = vst [vmem:[#allocation7 + $0x50] sm:$0xff] %v286_v32 }
 0x14d   :  { %v290_v34 = vpop.f32.mrb[8].mxu0 }
 0x14e   :  { %v543_v35 = vpop.f32.mrb[8].mxu1  ;;  %694 = vst [vmem:[#allocation7 + $0x60] sm:$0xff] %v290_v34  ;;  %v292_v36 = vpop.f32.mrb[9].mxu0 }
 0x14f   :  { %696 = vst [vmem:[#allocation7 + $0x70] sm:$0xff] %v543_v35  ;;  %v545_v37 = vpop.f32.mrb[9].mxu1  ;;  %695 = vst [vmem:[#allocation7 + $0x68] sm:$0xff] %v292_v36 }
 0x151   :  { %v296_v38 = vpop.f32.mrb[10].mxu0 }
 0x152   :  { %v548_v39 = vpop.f32.mrb[10].mxu1  ;;  %697 = vst [vmem:[#allocation7 + $0x78] sm:$0xff] %v296_v38  ;;  %v298_v40 = vpop.f32.mrb[11].mxu0 }
 0x153   :  { %699 = vst [vmem:[#allocation7 + $0x88] sm:$0xff] %v548_v39  ;;  %v550_v41 = vpop.f32.mrb[11].mxu1  ;;  %698 = vst [vmem:[#allocation7 + $0x80] sm:$0xff] %v298_v40 }
 0x155   :  { %v302_v42 = vpop.f32.mrb[12].mxu0 }
 0x156   :  { %v553_v43 = vpop.f32.mrb[12].mxu1  ;;  %700 = vst [vmem:[#allocation7 + $0x90] sm:$0xff] %v302_v42  ;;  %v304_v44 = vpop.f32.mrb[13].mxu0 }
 0x157   :  { %702 = vst [vmem:[#allocation7 + $0xa0] sm:$0xff] %v553_v43  ;;  %v555_v45 = vpop.f32.mrb[13].mxu1  ;;  %701 = vst [vmem:[#allocation7 + $0x98] sm:$0xff] %v304_v44 }
 0x159   :  { %v308_v46 = vpop.f32.mrb[14].mxu0 }
 0x15a   :  { %v558_v47 = vpop.f32.mrb[14].mxu1  ;;  %703 = vst [vmem:[#allocation7 + $0xa8] sm:$0xff] %v308_v46  ;;  %v310_v48 = vpop.f32.mrb[15].mxu0 }
 0x15b   :  { %705 = vst [vmem:[#allocation7 + $0xb8] sm:$0xff] %v558_v47  ;;  %v560_v49 = vpop.f32.mrb[15].mxu1  ;;  %704 = vst [vmem:[#allocation7 + $0xb0] sm:$0xff] %v310_v48 }
 0x15d   :  { %v314_v50 = vpop.f32.mrb[16].mxu0 }
 0x15e   :  { %v563_v51 = vpop.f32.mrb[16].mxu1  ;;  %706 = vst [vmem:[#allocation7 + $0xc0] sm:$0xff] %v314_v50  ;;  %v316_v52 = vpop.f32.mrb[17].mxu0 }
 0x15f   :  { %708 = vst [vmem:[#allocation7 + $0xd0] sm:$0xff] %v563_v51  ;;  %v565_v53 = vpop.f32.mrb[17].mxu1  ;;  %707 = vst [vmem:[#allocation7 + $0xc8] sm:$0xff] %v316_v52 }
 0x161   :  { %v320_v54 = vpop.f32.mrb[18].mxu0 }
 0x162   :  { %v568_v55 = vpop.f32.mrb[18].mxu1  ;;  %709 = vst [vmem:[#allocation7 + $0xd8] sm:$0xff] %v320_v54  ;;  %v322_v56 = vpop.f32.mrb[19].mxu0 }
 0x163   :  { %711 = vst [vmem:[#allocation7 + $0xe8] sm:$0xff] %v568_v55  ;;  %v570_v57 = vpop.f32.mrb[19].mxu1  ;;  %710 = vst [vmem:[#allocation7 + $0xe0] sm:$0xff] %v322_v56 }
 0x165   :  { %v326_v58 = vpop.f32.mrb[20].mxu0 }
 0x166   :  { %v573_v59 = vpop.f32.mrb[20].mxu1  ;;  %712 = vst [vmem:[#allocation7 + $0xf0] sm:$0xff] %v326_v58  ;;  %v328_v60 = vpop.f32.mrb[21].mxu0 }
 0x167   :  { %714 = vst [vmem:[#allocation7 + $0x100] sm:$0xff] %v573_v59  ;;  %v575_v61 = vpop.f32.mrb[21].mxu1  ;;  %713 = vst [vmem:[#allocation7 + $0xf8] sm:$0xff] %v328_v60 }
 0x169   :  { %v332_v62 = vpop.f32.mrb[22].mxu0 }
 0x16a   :  { %v578_v63 = vpop.f32.mrb[22].mxu1  ;;  %715 = vst [vmem:[#allocation7 + $0x108] sm:$0xff] %v332_v62  ;;  %v334_v1 = vpop.f32.mrb[23].mxu0 }
 0x16b   :  { %717 = vst [vmem:[#allocation7 + $0x118] sm:$0xff] %v578_v63  ;;  %v580_v2 = vpop.f32.mrb[23].mxu1  ;;  %716 = vst [vmem:[#allocation7 + $0x110] sm:$0xff] %v334_v1 }
 0x16d   :  { %v338_v3 = vpop.f32.mrb[24].mxu0 }
 0x16e   :  { %v583_v4 = vpop.f32.mrb[24].mxu1  ;;  %718 = vst [vmem:[#allocation7 + $0x120] sm:$0xff] %v338_v3  ;;  %v340_v5 = vpop.f32.mrb[25].mxu0 }
 0x16f   :  { %720 = vst [vmem:[#allocation7 + $0x130] sm:$0xff] %v583_v4  ;;  %v585_v6 = vpop.f32.mrb[25].mxu1  ;;  %719 = vst [vmem:[#allocation7 + $0x128] sm:$0xff] %v340_v5 }
 0x171   :  { %v344_v7 = vpop.f32.mrb[26].mxu0 }
 0x172   :  { %v588_v8 = vpop.f32.mrb[26].mxu1  ;;  %721 = vst [vmem:[#allocation7 + $0x138] sm:$0xff] %v344_v7  ;;  %v346_v9 = vpop.f32.mrb[27].mxu0 }
 0x173   :  { %723 = vst [vmem:[#allocation7 + $0x148] sm:$0xff] %v588_v8  ;;  %v590_v10 = vpop.f32.mrb[27].mxu1  ;;  %722 = vst [vmem:[#allocation7 + $0x140] sm:$0xff] %v346_v9 }
 0x175   :  { %v350_v11 = vpop.f32.mrb[28].mxu0 }
 0x176   :  { %v593_v12 = vpop.f32.mrb[28].mxu1  ;;  %724 = vst [vmem:[#allocation7 + $0x150] sm:$0xff] %v350_v11  ;;  %v352_v13 = vpop.f32.mrb[29].mxu0 }
 0x177   :  { %726 = vst [vmem:[#allocation7 + $0x160] sm:$0xff] %v593_v12  ;;  %v595_v14 = vpop.f32.mrb[29].mxu1  ;;  %725 = vst [vmem:[#allocation7 + $0x158] sm:$0xff] %v352_v13 }
 0x179   :  { %v356_v15 = vpop.f32.mrb[30].mxu0 }
 0x17a   :  { %v598_v16 = vpop.f32.mrb[30].mxu1  ;;  %727 = vst [vmem:[#allocation7 + $0x168] sm:$0xff] %v356_v15  ;;  %v358_v17 = vpop.f32.mrb[31].mxu0 }
 0x17b   :  { %729 = vst [vmem:[#allocation7 + $0x178] sm:$0xff] %v598_v16  ;;  %v600_v18 = vpop.f32.mrb[31].mxu1  ;;  %728 = vst [vmem:[#allocation7 + $0x170] sm:$0xff] %v358_v17 }
 0x17d   :  { %v362_v19 = vpop.f32.mrb[32].mxu0 }
 0x17e   :  { %v603_v20 = vpop.f32.mrb[32].mxu1  ;;  %730 = vst [vmem:[#allocation7 + $0x180] sm:$0xff] %v362_v19  ;;  %v364_v21 = vpop.f32.mrb[33].mxu0 }
 0x17f   :  { %732 = vst [vmem:[#allocation7 + $0x190] sm:$0xff] %v603_v20  ;;  %v605_v22 = vpop.f32.mrb[33].mxu1  ;;  %731 = vst [vmem:[#allocation7 + $0x188] sm:$0xff] %v364_v21 }
 0x181   :  { %v368_v23 = vpop.f32.mrb[34].mxu0 }
 0x182   :  { %v608_v24 = vpop.f32.mrb[34].mxu1  ;;  %733 = vst [vmem:[#allocation7 + $0x198] sm:$0xff] %v368_v23  ;;  %v370_v25 = vpop.f32.mrb[35].mxu0 }
 0x183   :  { %735 = vst [vmem:[#allocation7 + $0x1a8] sm:$0xff] %v608_v24  ;;  %v610_v0 = vpop.f32.mrb[35].mxu1  ;;  %734 = vst [vmem:[#allocation7 + $0x1a0] sm:$0xff] %v370_v25 }
 0x185   :  { %v374_v26 = vpop.f32.mrb[36].mxu0 }
 0x186   :  { %v613_v27 = vpop.f32.mrb[36].mxu1  ;;  %736 = vst [vmem:[#allocation7 + $0x1b0] sm:$0xff] %v374_v26  ;;  %v376_v28 = vpop.f32.mrb[37].mxu0 }
 0x187   :  { %738 = vst [vmem:[#allocation7 + $0x1c0] sm:$0xff] %v613_v27  ;;  %v615_v29 = vpop.f32.mrb[37].mxu1  ;;  %737 = vst [vmem:[#allocation7 + $0x1b8] sm:$0xff] %v376_v28 }
 0x189   :  { %v380_v30 = vpop.f32.mrb[38].mxu0 }
 0x18a   :  { %v618_v31 = vpop.f32.mrb[38].mxu1  ;;  %739 = vst [vmem:[#allocation7 + $0x1c8] sm:$0xff] %v380_v30  ;;  %v382_v32 = vpop.f32.mrb[39].mxu0 }
 0x18b   :  { %741 = vst [vmem:[#allocation7 + $0x1d8] sm:$0xff] %v618_v31  ;;  %v620_v33 = vpop.f32.mrb[39].mxu1  ;;  %740 = vst [vmem:[#allocation7 + $0x1d0] sm:$0xff] %v382_v32 }
 0x18d   :  { %v386_v34 = vpop.f32.mrb[40].mxu0 }
 0x18e   :  { %v623_v35 = vpop.f32.mrb[40].mxu1  ;;  %742 = vst [vmem:[#allocation7 + $0x1e0] sm:$0xff] %v386_v34  ;;  %v388_v36 = vpop.f32.mrb[41].mxu0 }
 0x18f   :  { %744 = vst [vmem:[#allocation7 + $0x1f0] sm:$0xff] %v623_v35  ;;  %v625_v37 = vpop.f32.mrb[41].mxu1  ;;  %743 = vst [vmem:[#allocation7 + $0x1e8] sm:$0xff] %v388_v36 }
 0x191   :  { %v392_v38 = vpop.f32.mrb[42].mxu0 }
 0x192   :  { %v628_v39 = vpop.f32.mrb[42].mxu1  ;;  %745 = vst [vmem:[#allocation7 + $0x1f8] sm:$0xff] %v392_v38  ;;  %v394_v40 = vpop.f32.mrb[43].mxu0 }
 0x193   :  { %747 = vst [vmem:[#allocation7 + $0x208] sm:$0xff] %v628_v39  ;;  %v630_v41 = vpop.f32.mrb[43].mxu1  ;;  %746 = vst [vmem:[#allocation7 + $0x200] sm:$0xff] %v394_v40 }
 0x195   :  { %v398_v42 = vpop.f32.mrb[44].mxu0 }
 0x196   :  { %v633_v43 = vpop.f32.mrb[44].mxu1  ;;  %748 = vst [vmem:[#allocation7 + $0x210] sm:$0xff] %v398_v42  ;;  %v400_v44 = vpop.f32.mrb[45].mxu0 }
 0x197   :  { %750 = vst [vmem:[#allocation7 + $0x220] sm:$0xff] %v633_v43  ;;  %v635_v45 = vpop.f32.mrb[45].mxu1  ;;  %749 = vst [vmem:[#allocation7 + $0x218] sm:$0xff] %v400_v44 }
 0x199   :  { %v404_v46 = vpop.f32.mrb[46].mxu0 }
 0x19a   :  { %v638_v47 = vpop.f32.mrb[46].mxu1  ;;  %751 = vst [vmem:[#allocation7 + $0x228] sm:$0xff] %v404_v46  ;;  %v406_v48 = vpop.f32.mrb[47].mxu0 }
 0x19b   :  { %753 = vst [vmem:[#allocation7 + $0x238] sm:$0xff] %v638_v47  ;;  %v640_v49 = vpop.f32.mrb[47].mxu1  ;;  %752 = vst [vmem:[#allocation7 + $0x230] sm:$0xff] %v406_v48 }
 0x19d   :  { %v410_v50 = vpop.f32.mrb[48].mxu0 }
 0x19e   :  { %v643_v51 = vpop.f32.mrb[48].mxu1  ;;  %754 = vst [vmem:[#allocation7 + $0x240] sm:$0xff] %v410_v50  ;;  %v412_v52 = vpop.f32.mrb[49].mxu0 }
 0x19f   :  { %756 = vst [vmem:[#allocation7 + $0x250] sm:$0xff] %v643_v51  ;;  %v645_v53 = vpop.f32.mrb[49].mxu1  ;;  %755 = vst [vmem:[#allocation7 + $0x248] sm:$0xff] %v412_v52 }
 0x1a1   :  { %v416_v54 = vpop.f32.mrb[50].mxu0 }
 0x1a2   :  { %v648_v55 = vpop.f32.mrb[50].mxu1  ;;  %757 = vst [vmem:[#allocation7 + $0x258] sm:$0xff] %v416_v54  ;;  %v418_v56 = vpop.f32.mrb[51].mxu0 }
 0x1a3   :  { %759 = vst [vmem:[#allocation7 + $0x268] sm:$0xff] %v648_v55  ;;  %v650_v57 = vpop.f32.mrb[51].mxu1  ;;  %758 = vst [vmem:[#allocation7 + $0x260] sm:$0xff] %v418_v56 }
 0x1a5   :  { %v422_v58 = vpop.f32.mrb[52].mxu0 }
 0x1a6   :  { %v653_v59 = vpop.f32.mrb[52].mxu1  ;;  %760 = vst [vmem:[#allocation7 + $0x270] sm:$0xff] %v422_v58  ;;  %v424_v60 = vpop.f32.mrb[53].mxu0 }
 0x1a7   :  { %762 = vst [vmem:[#allocation7 + $0x280] sm:$0xff] %v653_v59  ;;  %v655_v61 = vpop.f32.mrb[53].mxu1  ;;  %761 = vst [vmem:[#allocation7 + $0x278] sm:$0xff] %v424_v60 }
 0x1a9   :  { %v428_v62 = vpop.f32.mrb[54].mxu0 }
 0x1aa   :  { %v658_v63 = vpop.f32.mrb[54].mxu1  ;;  %763 = vst [vmem:[#allocation7 + $0x288] sm:$0xff] %v428_v62  ;;  %v430_v1 = vpop.f32.mrb[55].mxu0 }
 0x1ab   :  { %765 = vst [vmem:[#allocation7 + $0x298] sm:$0xff] %v658_v63  ;;  %v660_v2 = vpop.f32.mrb[55].mxu1  ;;  %764 = vst [vmem:[#allocation7 + $0x290] sm:$0xff] %v430_v1 }
 0x1ad   :  { %v434_v3 = vpop.f32.mrb[56].mxu0 }
 0x1ae   :  { %v663_v4 = vpop.f32.mrb[56].mxu1  ;;  %766 = vst [vmem:[#allocation7 + $0x2a0] sm:$0xff] %v434_v3  ;;  %v436_v5 = vpop.f32.mrb[57].mxu0 }
 0x1af   :  { %768 = vst [vmem:[#allocation7 + $0x2b0] sm:$0xff] %v663_v4  ;;  %v665_v6 = vpop.f32.mrb[57].mxu1  ;;  %767 = vst [vmem:[#allocation7 + $0x2a8] sm:$0xff] %v436_v5 }
 0x1b1   :  { %v440_v7 = vpop.f32.mrb[58].mxu0 }
 0x1b2   :  { %v668_v8 = vpop.f32.mrb[58].mxu1  ;;  %769 = vst [vmem:[#allocation7 + $0x2b8] sm:$0xff] %v440_v7  ;;  %v442_v9 = vpop.f32.mrb[59].mxu0 }
 0x1b3   :  { %771 = vst [vmem:[#allocation7 + $0x2c8] sm:$0xff] %v668_v8  ;;  %v670_v10 = vpop.f32.mrb[59].mxu1  ;;  %770 = vst [vmem:[#allocation7 + $0x2c0] sm:$0xff] %v442_v9 }
 0x1b5   :  { %v446_v11 = vpop.f32.mrb[60].mxu0 }
 0x1b6   :  { %v673_v12 = vpop.f32.mrb[60].mxu1  ;;  %772 = vst [vmem:[#allocation7 + $0x2d0] sm:$0xff] %v446_v11  ;;  %v448_v13 = vpop.f32.mrb[61].mxu0 }
 0x1b7   :  { %774 = vst [vmem:[#allocation7 + $0x2e0] sm:$0xff] %v673_v12  ;;  %v675_v14 = vpop.f32.mrb[61].mxu1  ;;  %773 = vst [vmem:[#allocation7 + $0x2d8] sm:$0xff] %v448_v13 }
 0x1b9   :  { %v452_v15 = vpop.f32.mrb[62].mxu0 }
 0x1ba   :  { %v678_v16 = vpop.f32.mrb[62].mxu1  ;;  %775 = vst [vmem:[#allocation7 + $0x2e8] sm:$0xff] %v452_v15  ;;  %v454_v17 = vpop.f32.mrb[63].mxu0 }
 0x1bb   :  { %777 = vst [vmem:[#allocation7 + $0x2f8] sm:$0xff] %v678_v16  ;;  %v680_v18 = vpop.f32.mrb[63].mxu1  ;;  %776 = vst [vmem:[#allocation7 + $0x2f0] sm:$0xff] %v454_v17 }
 0x1bc   :  { %971 = shalt.err (!%p968_p6)
}
 0x1bd   :  { %s972_s12 = scalar_lea.hbm %s1071_s2, 12288 }
 0x1be   :  { %p973_p7 = scmp.ne.s32.totalorder %s1071_s2, %s972_s12  ;;  %p976_p8 = scmp.lt.u32.totalorder %s972_s12, %s1071_s2 }
 0x1c0   :  { %p978_p9 = pnand %p976_p8, %p973_p7 }
 0x1c2   :  { %981 = shalt.err (!%p978_p9)
}
 0x1c3   :  { %789 = dma.vmem_to_hbm [thread:$0]  %s784_s8, 12288, %s1071_s2, [#allocation4], %s992_s0, %s992_s0, %s993_s5  }
 0x1c4   :  { %986 = dma.done.wait [#allocation4], 12288  }
 0x1c5   :  { %987 = vsyncadd [#allocation4], 4294955008 }
 0x1c6   :  { %793 = vsyncpa [#allocation3], 1 }
 0x1c7   :  { %794 = vsyncpa [#allocation6], 1 }
 0x1c8   :  { %795 = vsyncpa [#allocation4], 1 }

// kernel: tpu_custom_call.1
= control target key start
LH: loop header
LB: loop body
LE: loop exit
PB: predicated region body
PF: predicated region fallthrough
CT: control target
= control target key end

     0   :  { %7 = vsyncpa [#allocation3], 0  ;;  %s1069_s0 = inlined_call_operand.hbm [shape: f32[256,256], index: 0, kind: input, shape index: {}]   ;;  %s1070_s1 = inlined_call_operand.hbm [shape: f32[256,384], index: 1, kind: input, shape index: {}]   ;;  %s1071_s2 = inlined_call_operand.hbm [shape: f32[256,384], index: 2, kind: output, shape index: {}]  }
   0x1   :  { %8 = vsyncpa [#allocation6], 0 }
   0x2   :  { %9 = vsyncpa [#allocation4], 0  ;;  %s988_s9 = smov [#allocation2]   ;;  %s916_s13 = scalar_lea.hbm %s1069_s0, 8192 }
   0x3   :  { %s15_s10 = sshll.u32 %s988_s9, 4  ;;  %p917_p0 = scmp.ne.s32.totalorder %s1069_s0, %s916_s13  ;;  %s16_s10 = int_to_ptr.vmem [resolvable:$true] %s15_s10 }
   0x4   :  { %p920_p1 = scmp.lt.u32.totalorder %s916_s13, %s1069_s0 }
   0x6   :  { %p922_p2 = pnand %p920_p1, %p917_p0 }
   0x8   :  { %925 = shalt.err (!%p922_p2)
}
   0x9   :  { %s926_s18 = scalar_lea.vmem %s16_s10, 8192  ;;  %p931_p4 = scmp.lt.s32.totalorder %s16_s10, %s16_s10 }
   0xa   :  { %p927_p3 = scmp.ne.s32.totalorder %s16_s10, %s926_s18  ;;  %p932_p5 = scmp.lt.s32.totalorder %s926_s18, %s926_s18 }
   0xc   :  { %p933_p6 = por %p932_p5, %p931_p4 }
   0xe   :  { %p934_p7 = pnand %p933_p6, %p927_p3 }
  0x10   :  { %937 = shalt.err (!%p934_p7)
}
  0x11   :  { %s989_s19 = smov 256   ;;  %s990_s20 = smov 16  }
  0x12   :  { %21 = dma.hbm_to_vmem [thread:$0]  %s1069_s0, 8192, %s16_s10, [#allocation3], %s989_s19, %s989_s19, %s990_s20  }
  0x13   :  { %s991_s23 = smov [#allocation5]   ;;  %s938_s27 = scalar_lea.hbm %s1070_s1, 12288 }
  0x14   :  { %s27_s24 = sshll.u32 %s991_s23, 4  ;;  %p939_p8 = scmp.ne.s32.totalorder %s1070_s1, %s938_s27  ;;  %s28_s24 = int_to_ptr.vmem [resolvable:$true] %s27_s24 }
  0x15   :  { %p942_p9 = scmp.lt.u32.totalorder %s938_s27, %s1070_s1 }
  0x17   :  { %p944_p10 = pnand %p942_p9, %p939_p8 }
  0x19   :  { %947 = shalt.err (!%p944_p10)
}
  0x1a   :  { %s948_s4 = scalar_lea.vmem %s28_s24, 12288  ;;  %p953_p12 = scmp.lt.s32.totalorder %s28_s24, %s28_s24 }
  0x1b   :  { %p949_p11 = scmp.ne.s32.totalorder %s28_s24, %s948_s4  ;;  %p954_p13 = scmp.lt.s32.totalorder %s948_s4, %s948_s4 }
  0x1d   :  { %p955_p0 = por %p954_p13, %p953_p12 }
  0x1f   :  { %p956_p1 = pnand %p955_p0, %p949_p11 }
  0x21   :  { %959 = shalt.err (!%p956_p1)
}
  0x22   :  { %s992_s0 = smov 384   ;;  %s993_s5 = smov 24  }
  0x23   :  { %33 = dma.hbm_to_vmem [thread:$0]  %s1070_s1, 12288, %s28_s24, [#allocation6], %s992_s0, %s992_s0, %s993_s5  }
  0x24   :  { %982 = dma.done.wait [#allocation3], 8192  }
  0x25   :  { %983 = vsyncadd [#allocation3], 4294959104 }
  0x26   :  { %984 = dma.done.wait [#allocation6], 12288  }
  0x27   :  { %985 = vsyncadd [#allocation6], 4294955008  ;;  %v994_v0 = vmov 0.0|0.0   ;;  %v105_v1 = vld [vmem:[#allocation5 + $0x8] sm:$0xff]  ;;  %v108_v2 = vld [vmem:[#allocation5 + $0x20] sm:$0xff]  ;;  %s995_s1 = smov [#allocation7]  }
  0x28   :  { %860 = vmatprep.subr.bf16.mxu1 %v994_v0  ;;  %v104_v3 = vld [vmem:[#allocation5] sm:$0xff]  ;;  %v796_v4 = vpack.c.bf16 %v108_v2, %v105_v1  ;;  %v107_v5 = vld [vmem:[#allocation5 + $0x18] sm:$0xff]  ;;  %v106_v6 = vld [vmem:[#allocation5 + $0x10] sm:$0xff]  ;;  %s783_s8 = sshll.u32 %s995_s1, 4  ;;  %s784_s8 = int_to_ptr.vmem [resolvable:$true] %s783_s8 }
  0x29   :  { %v109_v7 = vld [vmem:[#allocation5 + $0x28] sm:$0xff]  ;;  %v798_v8 = vpack.c.bf16 %v107_v5, %v104_v3  ;;  %v111_v10 = vld [vmem:[#allocation5 + $0x38] sm:$0xff]  ;;  %v114_v11 = vld [vmem:[#allocation5 + $0x50] sm:$0xff]  ;;  %s960_s9 = scalar_lea.vmem %s784_s8, 12288  ;;  %p965_p3 = scmp.lt.s32.totalorder %s784_s8, %s784_s8 }
  0x2a   :  { %v861_v9 = vpack.c.bf16 %v109_v7, %v106_v6  ;;  %v110_v12 = vld [vmem:[#allocation5 + $0x30] sm:$0xff]  ;;  %797 = vmatprep.subr.bf16.mxu0 %v796_v4  ;;  %v800_v13 = vpack.c.bf16 %v114_v11, %v111_v10  ;;  %v113_v14 = vld [vmem:[#allocation5 + $0x48] sm:$0xff]  ;;  %v112_v15 = vld [vmem:[#allocation5 + $0x40] sm:$0xff]  ;;  %p961_p2 = scmp.ne.s32.totalorder %s784_s8, %s960_s9  ;;  %p966_p4 = scmp.lt.s32.totalorder %s960_s9, %s960_s9 }
  0x2b   :  { %v115_v16 = vld [vmem:[#allocation5 + $0x58] sm:$0xff]  ;;  %799 = vmatpush1.bf16.msra.mxu0 %v798_v8  ;;  %v802_v17 = vpack.c.bf16 %v113_v14, %v110_v12  ;;  %v117_v19 = vld [vmem:[#allocation5 + $0x68] sm:$0xff]  ;;  %v120_v20 = vld [vmem:[#allocation5 + $0x80] sm:$0xff] }
  0x2c   :  { %862 = vmatpush1.bf16.msra.mxu1 %v861_v9  ;;  %v864_v18 = vpack.c.bf16 %v115_v16, %v112_v15  ;;  %v116_v21 = vld [vmem:[#allocation5 + $0x60] sm:$0xff]  ;;  %801 = vmatprep.subr.bf16.mxu0 %v800_v13  ;;  %v804_v22 = vpack.c.bf16 %v120_v20, %v117_v19  ;;  %v119_v23 = vld [vmem:[#allocation5 + $0x78] sm:$0xff]  ;;  %v118_v24 = vld [vmem:[#allocation5 + $0x70] sm:$0xff]  ;;  %p967_p5 = por %p966_p4, %p965_p3 }
  0x2d   :  { %863 = vmatprep.subr.bf16.mxu1 %v994_v0  ;;  %v121_v25 = vld [vmem:[#allocation5 + $0x88] sm:$0xff]  ;;  %v123_v26 = vld [vmem:[#allocation5 + $0x98] sm:$0xff]  ;;  %v126_v27 = vld [vmem:[#allocation5 + $0xb0] sm:$0xff]  ;;  %v806_v28 = vpack.c.bf16 %v119_v23, %v116_v21 }
  0x2e   :  { %v867_v29 = vpack.c.bf16 %v121_v25, %v118_v24  ;;  %v122_v30 = vld [vmem:[#allocation5 + $0x90] sm:$0xff]  ;;  %v808_v31 = vpack.c.bf16 %v126_v27, %v123_v26  ;;  %v125_v32 = vld [vmem:[#allocation5 + $0xa8] sm:$0xff]  ;;  %v124_v33 = vld [vmem:[#allocation5 + $0xa0] sm:$0xff]  ;;  %p968_p6 = pnand %p967_p5, %p961_p2 }
  0x2f   :  { %803 = vmatpush1.bf16.msra.mxu0 %v802_v17  ;;  %v127_v34 = vld [vmem:[#allocation5 + $0xb8] sm:$0xff]  ;;  %v129_v35 = vld [vmem:[#allocation5 + $0xc8] sm:$0xff]  ;;  %v132_v36 = vld [vmem:[#allocation5 + $0xe0] sm:$0xff]  ;;  %v810_v37 = vpack.c.bf16 %v125_v32, %v122_v30 }
  0x30   :  { %865 = vmatpush1.bf16.msra.mxu1 %v864_v18  ;;  %805 = vmatprep.subr.bf16.mxu0 %v804_v22  ;;  %v870_v38 = vpack.c.bf16 %v127_v34, %v124_v33  ;;  %v128_v39 = vld [vmem:[#allocation5 + $0xc0] sm:$0xff]  ;;  %v812_v40 = vpack.c.bf16 %v132_v36, %v129_v35  ;;  %v131_v41 = vld [vmem:[#allocation5 + $0xd8] sm:$0xff]  ;;  %v130_v42 = vld [vmem:[#allocation5 + $0xd0] sm:$0xff] }
  0x31   :  { %866 = vmatprep.subr.bf16.mxu1 %v994_v0  ;;  %v133_v43 = vld [vmem:[#allocation5 + $0xe8] sm:$0xff]  ;;  %v135_v44 = vld [vmem:[#allocation5 + $0xf8] sm:$0xff]  ;;  %v138_v45 = vld [vmem:[#allocation5 + $0x110] sm:$0xff]  ;;  %v814_v46 = vpack.c.bf16 %v131_v41, %v128_v39 }
  0x32   :  { %v873_v47 = vpack.c.bf16 %v133_v43, %v130_v42  ;;  %v134_v48 = vld [vmem:[#allocation5 + $0xf0] sm:$0xff]  ;;  %v816_v49 = vpack.c.bf16 %v138_v45, %v135_v44  ;;  %v137_v50 = vld [vmem:[#allocation5 + $0x108] sm:$0xff]  ;;  %v136_v51 = vld [vmem:[#allocation5 + $0x100] sm:$0xff] }
  0x33   :  { %807 = vmatpush1.bf16.msra.mxu0 %v806_v28  ;;  %v139_v52 = vld [vmem:[#allocation5 + $0x118] sm:$0xff]  ;;  %v141_v53 = vld [vmem:[#allocation5 + $0x128] sm:$0xff]  ;;  %v144_v54 = vld [vmem:[#allocation5 + $0x140] sm:$0xff]  ;;  %v818_v55 = vpack.c.bf16 %v137_v50, %v134_v48 }
  0x34   :  { %868 = vmatpush1.bf16.msra.mxu1 %v867_v29  ;;  %809 = vmatprep.subr.bf16.mxu0 %v808_v31  ;;  %v876_v56 = vpack.c.bf16 %v139_v52, %v136_v51  ;;  %v140_v57 = vld [vmem:[#allocation5 + $0x120] sm:$0xff]  ;;  %v820_v58 = vpack.c.bf16 %v144_v54, %v141_v53  ;;  %v143_v59 = vld [vmem:[#allocation5 + $0x138] sm:$0xff]  ;;  %v142_v60 = vld [vmem:[#allocation5 + $0x130] sm:$0xff] }
  0x35   :  { %869 = vmatprep.subr.bf16.mxu1 %v994_v0  ;;  %v145_v61 = vld [vmem:[#allocation5 + $0x148] sm:$0xff]  ;;  %v147_v62 = vld [vmem:[#allocation5 + $0x158] sm:$0xff]  ;;  %v150_v63 = vld [vmem:[#allocation5 + $0x170] sm:$0xff]  ;;  %v822_v1 = vpack.c.bf16 %v143_v59, %v140_v57 }
  0x36   :  { %v879_v2 = vpack.c.bf16 %v145_v61, %v142_v60  ;;  %v146_v3 = vld [vmem:[#allocation5 + $0x150] sm:$0xff]  ;;  %v824_v4 = vpack.c.bf16 %v150_v63, %v147_v62  ;;  %v149_v5 = vld [vmem:[#allocation5 + $0x168] sm:$0xff]  ;;  %v148_v6 = vld [vmem:[#allocation5 + $0x160] sm:$0xff] }
  0x37   :  { %811 = vmatpush1.bf16.msra.mxu0 %v810_v37  ;;  %v151_v7 = vld [vmem:[#allocation5 + $0x178] sm:$0xff]  ;;  %v153_v8 = vld [vmem:[#allocation5 + $0x188] sm:$0xff]  ;;  %v156_v9 = vld [vmem:[#allocation5 + $0x1a0] sm:$0xff]  ;;  %v826_v10 = vpack.c.bf16 %v149_v5, %v146_v3 }
  0x38   :  { %871 = vmatpush1.bf16.msra.mxu1 %v870_v38  ;;  %813 = vmatprep.subr.bf16.mxu0 %v812_v40  ;;  %v882_v11 = vpack.c.bf16 %v151_v7, %v148_v6  ;;  %v152_v12 = vld [vmem:[#allocation5 + $0x180] sm:$0xff]  ;;  %v828_v13 = vpack.c.bf16 %v156_v9, %v153_v8  ;;  %v155_v14 = vld [vmem:[#allocation5 + $0x198] sm:$0xff]  ;;  %v154_v15 = vld [vmem:[#allocation5 + $0x190] sm:$0xff] }
  0x39   :  { %872 = vmatprep.subr.bf16.mxu1 %v994_v0  ;;  %v157_v16 = vld [vmem:[#allocation5 + $0x1a8] sm:$0xff]  ;;  %v159_v17 = vld [vmem:[#allocation5 + $0x1b8] sm:$0xff]  ;;  %v162_v18 = vld [vmem:[#allocation5 + $0x1d0] sm:$0xff]  ;;  %v830_v19 = vpack.c.bf16 %v155_v14, %v152_v12 }
  0x3a   :  { %v885_v20 = vpack.c.bf16 %v157_v16, %v154_v15  ;;  %v158_v21 = vld [vmem:[#allocation5 + $0x1b0] sm:$0xff]  ;;  %v41_v22 = vld [vmem:[#allocation2 + $0x8] sm:$0xff]  ;;  %v832_v23 = vpack.c.bf16 %v162_v18, %v159_v17  ;;  %v160_v25 = vld [vmem:[#allocation5 + $0x1c0] sm:$0xff] }
  0x3b   :  { %815 = vmatpush1.bf16.msra.mxu0 %v814_v46  ;;  %v161_v24 = vld [vmem:[#allocation5 + $0x1c8] sm:$0xff]  ;;  %v163_v26 = vld [vmem:[#allocation5 + $0x1d8] sm:$0xff]  ;;  %v168_v28 = vld [vmem:[#allocation5 + $0x200] sm:$0xff]  ;;  %264 = vmatprep.mubr.f32.mxu0 %v41_v22 }
  0x3c   :  { %874 = vmatpush1.bf16.msra.mxu1 %v873_v47  ;;  %817 = vmatprep.subr.bf16.mxu0 %v816_v49  ;;  %v165_v27 = vld [vmem:[#allocation5 + $0x1e8] sm:$0xff]  ;;  %v834_v29 = vpack.c.bf16 %v161_v24, %v158_v21  ;;  %v888_v30 = vpack.c.bf16 %v163_v26, %v160_v25  ;;  %v164_v31 = vld [vmem:[#allocation5 + $0x1e0] sm:$0xff]  ;;  %v167_v33 = vld [vmem:[#allocation5 + $0x1f8] sm:$0xff] }
  0x3d   :  { %875 = vmatprep.subr.bf16.mxu1 %v994_v0  ;;  %521 = vmatprep.mubr.f32.mxu1 %v41_v22  ;;  %v836_v32 = vpack.c.bf16 %v168_v28, %v165_v27  ;;  %v166_v34 = vld [vmem:[#allocation5 + $0x1f0] sm:$0xff]  ;;  %v169_v35 = vld [vmem:[#allocation5 + $0x208] sm:$0xff]  ;;  %v171_v36 = vld [vmem:[#allocation5 + $0x218] sm:$0xff]  ;;  %v838_v38 = vpack.c.bf16 %v167_v33, %v164_v31 }
  0x3e   :  { %v174_v37 = vld [vmem:[#allocation5 + $0x230] sm:$0xff]  ;;  %v891_v39 = vpack.c.bf16 %v169_v35, %v166_v34  ;;  %v173_v42 = vld [vmem:[#allocation5 + $0x228] sm:$0xff]  ;;  %v172_v43 = vld [vmem:[#allocation5 + $0x220] sm:$0xff] }
  0x3f   :  { %819 = vmatpush1.bf16.msra.mxu0 %v818_v55  ;;  %v170_v40 = vld [vmem:[#allocation5 + $0x210] sm:$0xff]  ;;  %v840_v41 = vpack.c.bf16 %v174_v37, %v171_v36  ;;  %v175_v44 = vld [vmem:[#allocation5 + $0x238] sm:$0xff]  ;;  %v177_v45 = vld [vmem:[#allocation5 + $0x248] sm:$0xff] }
  0x40   :  { %877 = vmatpush1.bf16.msra.mxu1 %v876_v56  ;;  %821 = vmatprep.subr.bf16.mxu0 %v820_v58  ;;  %v180_v46 = vld [vmem:[#allocation5 + $0x260] sm:$0xff]  ;;  %v842_v47 = vpack.c.bf16 %v173_v42, %v170_v40  ;;  %v894_v48 = vpack.c.bf16 %v175_v44, %v172_v43  ;;  %v179_v51 = vld [vmem:[#allocation5 + $0x258] sm:$0xff]  ;;  %v178_v52 = vld [vmem:[#allocation5 + $0x250] sm:$0xff] }
  0x41   :  { %878 = vmatprep.subr.bf16.mxu1 %v994_v0  ;;  %v176_v49 = vld [vmem:[#allocation5 + $0x240] sm:$0xff]  ;;  %v844_v50 = vpack.c.bf16 %v180_v46, %v177_v45  ;;  %v181_v53 = vld [vmem:[#allocation5 + $0x268] sm:$0xff]  ;;  %v183_v54 = vld [vmem:[#allocation5 + $0x278] sm:$0xff] }
  0x42   :  { %v186_v55 = vld [vmem:[#allocation5 + $0x290] sm:$0xff]  ;;  %v846_v56 = vpack.c.bf16 %v179_v51, %v176_v49  ;;  %v897_v57 = vpack.c.bf16 %v181_v53, %v178_v52  ;;  %v185_v60 = vld [vmem:[#allocation5 + $0x288] sm:$0xff]  ;;  %v184_v61 = vld [vmem:[#allocation5 + $0x280] sm:$0xff] }
  0x43   :  { %823 = vmatpush1.bf16.msra.mxu0 %v822_v1  ;;  %v182_v58 = vld [vmem:[#allocation5 + $0x270] sm:$0xff]  ;;  %v848_v59 = vpack.c.bf16 %v186_v55, %v183_v54  ;;  %v187_v62 = vld [vmem:[#allocation5 + $0x298] sm:$0xff]  ;;  %v189_v63 = vld [vmem:[#allocation5 + $0x2a8] sm:$0xff] }
  0x44   :  { %880 = vmatpush1.bf16.msra.mxu1 %v879_v2  ;;  %825 = vmatprep.subr.bf16.mxu0 %v824_v4  ;;  %v192_v1 = vld [vmem:[#allocation5 + $0x2c0] sm:$0xff]  ;;  %v850_v2 = vpack.c.bf16 %v185_v60, %v182_v58  ;;  %v900_v3 = vpack.c.bf16 %v187_v62, %v184_v61  ;;  %v191_v6 = vld [vmem:[#allocation5 + $0x2b8] sm:$0xff]  ;;  %v190_v7 = vld [vmem:[#allocation5 + $0x2b0] sm:$0xff] }
  0x45   :  { %881 = vmatprep.subr.bf16.mxu1 %v994_v0  ;;  %v188_v4 = vld [vmem:[#allocation5 + $0x2a0] sm:$0xff]  ;;  %v852_v5 = vpack.c.bf16 %v192_v1, %v189_v63  ;;  %v193_v8 = vld [vmem:[#allocation5 + $0x2c8] sm:$0xff]  ;;  %v195_v9 = vld [vmem:[#allocation5 + $0x2d8] sm:$0xff] }
  0x46   :  { %v903_v12 = vpack.c.bf16 %v193_v8, %v190_v7  ;;  %v197_v15 = vld [vmem:[#allocation5 + $0x2e8] sm:$0xff]  ;;  %v196_v16 = vld [vmem:[#allocation5 + $0x2e0] sm:$0xff]  ;;  %v199_v17 = vld [vmem:[#allocation5 + $0x2f8] sm:$0xff] }
  0x47   :  { %827 = vmatpush1.bf16.msra.mxu0 %v826_v10  ;;  %v198_v10 = vld [vmem:[#allocation5 + $0x2f0] sm:$0xff]  ;;  %v43_v21 = vld [vmem:[#allocation2 + $0x18] sm:$0xff]  ;;  %v44_v24 = vld [vmem:[#allocation2 + $0x20] sm:$0xff] }
  0x48   :  { %883 = vmatpush1.bf16.msra.mxu1 %v882_v11  ;;  %829 = vmatprep.subr.bf16.mxu0 %v828_v13  ;;  %v854_v11 = vpack.c.bf16 %v191_v6, %v188_v4  ;;  %v194_v13 = vld [vmem:[#allocation5 + $0x2d0] sm:$0xff]  ;;  %v856_v14 = vpack.c.bf16 %v198_v10, %v195_v9  ;;  %v47_v25 = vld [vmem:[#allocation2 + $0x38] sm:$0xff]  ;;  %v49_v26 = vld [vmem:[#allocation2 + $0x48] sm:$0xff] }
  0x49   :  { %884 = vmatprep.subr.bf16.mxu1 %v994_v0  ;;  %v858_v18 = vpack.c.bf16 %v197_v15, %v194_v13  ;;  %v42_v22 = vld [vmem:[#allocation2 + $0x10] sm:$0xff]  ;;  %v48_v27 = vld [vmem:[#allocation2 + $0x40] sm:$0xff]  ;;  %v51_v28 = vld [vmem:[#allocation2 + $0x58] sm:$0xff] }
  0x4a   :  { %v52_v31 = vld [vmem:[#allocation2 + $0x60] sm:$0xff]  ;;  %v54_v33 = vld [vmem:[#allocation2 + $0x70] sm:$0xff]  ;;  %v57_v34 = vld [vmem:[#allocation2 + $0x88] sm:$0xff] }
  0x4b   :  { %831 = vmatpush1.bf16.msra.mxu0 %v830_v19  ;;  %v906_v19 = vpack.c.bf16 %v199_v17, %v196_v16  ;;  %v56_v35 = vld [vmem:[#allocation2 + $0x80] sm:$0xff]  ;;  %v59_v36 = vld [vmem:[#allocation2 + $0x98] sm:$0xff]  ;;  %v58_v37 = vld [vmem:[#allocation2 + $0x90] sm:$0xff] }
  0x4c   :  { %886 = vmatpush1.bf16.msra.mxu1 %v885_v20  ;;  %833 = vmatprep.subr.bf16.mxu0 %v832_v23  ;;  %v40_v20 = vld [vmem:[#allocation2] sm:$0xff]  ;;  %v45_v23 = vld [vmem:[#allocation2 + $0x28] sm:$0xff]  ;;  %v63_v40 = vld [vmem:[#allocation2 + $0xb8] sm:$0xff] }
  0x4d   :  { %887 = vmatprep.subr.bf16.mxu1 %v994_v0  ;;  %v65_v42 = vld [vmem:[#allocation2 + $0xc8] sm:$0xff]  ;;  %v64_v43 = vld [vmem:[#allocation2 + $0xc0] sm:$0xff]  ;;  %v67_v44 = vld [vmem:[#allocation2 + $0xd8] sm:$0xff] }
  0x4e   :  { %v66_v45 = vld [vmem:[#allocation2 + $0xd0] sm:$0xff]  ;;  %v69_v46 = vld [vmem:[#allocation2 + $0xe8] sm:$0xff]  ;;  %v72_v51 = vld [vmem:[#allocation2 + $0x100] sm:$0xff] }
  0x4f   :  { %835 = vmatpush1.bf16.msra.mxu0 %v834_v29  ;;  %v50_v29 = vld [vmem:[#allocation2 + $0x50] sm:$0xff]  ;;  %v75_v52 = vld [vmem:[#allocation2 + $0x118] sm:$0xff]  ;;  %v77_v54 = vld [vmem:[#allocation2 + $0x128] sm:$0xff] }
  0x50   :  { %889 = vmatpush1.bf16.msra.mxu1 %v888_v30  ;;  %837 = vmatprep.subr.bf16.mxu0 %v836_v32  ;;  %v53_v30 = vld [vmem:[#allocation2 + $0x68] sm:$0xff]  ;;  %v55_v32 = vld [vmem:[#allocation2 + $0x78] sm:$0xff]  ;;  %v70_v49 = vld [vmem:[#allocation2 + $0xf0] sm:$0xff] }
  0x51   :  { %890 = vmatprep.subr.bf16.mxu1 %v994_v0  ;;  %v74_v53 = vld [vmem:[#allocation2 + $0x110] sm:$0xff]  ;;  %v76_v55 = vld [vmem:[#allocation2 + $0x120] sm:$0xff]  ;;  %v81_v58 = vld [vmem:[#allocation2 + $0x148] sm:$0xff] }
  0x52   :  { %v83_v60 = vld [vmem:[#allocation2 + $0x158] sm:$0xff]  ;;  %v82_v61 = vld [vmem:[#allocation2 + $0x150] sm:$0xff]  ;;  %v85_v62 = vld [vmem:[#allocation2 + $0x168] sm:$0xff] }
  0x53   :  { %839 = vmatpush1.bf16.msra.mxu0 %v838_v38  ;;  %v61_v38 = vld [vmem:[#allocation2 + $0xa8] sm:$0xff]  ;;  %v84_v63 = vld [vmem:[#allocation2 + $0x160] sm:$0xff]  ;;  %v87_v1 = vld [vmem:[#allocation2 + $0x178] sm:$0xff] }
  0x54   :  { %892 = vmatpush1.bf16.msra.mxu1 %v891_v39  ;;  %841 = vmatprep.subr.bf16.mxu0 %v840_v41  ;;  %v60_v39 = vld [vmem:[#allocation2 + $0xa0] sm:$0xff]  ;;  %v62_v41 = vld [vmem:[#allocation2 + $0xb0] sm:$0xff]  ;;  %v93_v7 = vld [vmem:[#allocation2 + $0x1a8] sm:$0xff] }
  0x55   :  { %893 = vmatprep.subr.bf16.mxu1 %v994_v0  ;;  %v88_v4 = vld [vmem:[#allocation2 + $0x180] sm:$0xff]  ;;  %v90_v6 = vld [vmem:[#allocation2 + $0x190] sm:$0xff]  ;;  %v95_v9 = vld [vmem:[#allocation2 + $0x1b8] sm:$0xff] }
  0x56   :  { %v92_v8 = vld [vmem:[#allocation2 + $0x1a0] sm:$0xff]  ;;  %v94_v10 = vld [vmem:[#allocation2 + $0x1b0] sm:$0xff]  ;;  %v99_v13 = vld [vmem:[#allocation2 + $0x1d8] sm:$0xff] }
  0x57   :  { %843 = vmatpush1.bf16.msra.mxu0 %v842_v47  ;;  %v68_v47 = vld [vmem:[#allocation2 + $0xe0] sm:$0xff]  ;;  %v101_v15 = vld [vmem:[#allocation2 + $0x1e8] sm:$0xff]  ;;  %v103_v17 = vld [vmem:[#allocation2 + $0x1f8] sm:$0xff] }
  0x58   :  { %895 = vmatpush1.bf16.msra.mxu1 %v894_v48  ;;  %845 = vmatprep.subr.bf16.mxu0 %v844_v50  ;;  %v71_v48 = vld [vmem:[#allocation2 + $0xf8] sm:$0xff]  ;;  %v73_v50 = vld [vmem:[#allocation2 + $0x108] sm:$0xff]  ;;  %v100_v16 = vld [vmem:[#allocation2 + $0x1e0] sm:$0xff] }
  0x59   :  { %896 = vmatprep.subr.bf16.mxu1 %v994_v0 }
  0x5b   :  { %847 = vmatpush1.bf16.msra.mxu0 %v846_v56  ;;  %v79_v56 = vld [vmem:[#allocation2 + $0x138] sm:$0xff] }
  0x5c   :  { %898 = vmatpush1.bf16.msra.mxu1 %v897_v57  ;;  %849 = vmatprep.subr.bf16.mxu0 %v848_v59  ;;  %v78_v57 = vld [vmem:[#allocation2 + $0x130] sm:$0xff]  ;;  %v80_v59 = vld [vmem:[#allocation2 + $0x140] sm:$0xff] }
  0x5d   :  { %899 = vmatprep.subr.bf16.mxu1 %v994_v0 }
  0x5f   :  { %851 = vmatpush1.bf16.msra.mxu0 %v850_v2  ;;  %v86_v2 = vld [vmem:[#allocation2 + $0x170] sm:$0xff] }
  0x60   :  { %901 = vmatpush1.bf16.msra.mxu1 %v900_v3  ;;  %853 = vmatprep.subr.bf16.mxu0 %v852_v5  ;;  %v89_v3 = vld [vmem:[#allocation2 + $0x188] sm:$0xff]  ;;  %v91_v5 = vld [vmem:[#allocation2 + $0x198] sm:$0xff] }
  0x61   :  { %902 = vmatprep.subr.bf16.mxu1 %v994_v0 }
  0x63   :  { %855 = vmatpush1.bf16.msra.mxu0 %v854_v11  ;;  %v97_v11 = vld [vmem:[#allocation2 + $0x1c8] sm:$0xff] }
  0x64   :  { %904 = vmatpush1.bf16.msra.mxu1 %v903_v12  ;;  %857 = vmatprep.subr.bf16.mxu0 %v856_v14  ;;  %v96_v12 = vld [vmem:[#allocation2 + $0x1c0] sm:$0xff]  ;;  %v98_v14 = vld [vmem:[#allocation2 + $0x1d0] sm:$0xff] }
  0x65   :  { %905 = vmatprep.subr.bf16.mxu1 %v994_v0  ;;  %v46_v0 = vld [vmem:[#allocation2 + $0x30] sm:$0xff] }
  0x67   :  { %859 = vmatpush1.bf16.msra.mxu0 %v858_v18  ;;  %v102_v18 = vld [vmem:[#allocation2 + $0x1f0] sm:$0xff] }
  0x68   :  { %907 = vmatpush1.bf16.msra.mxu1 %v906_v19 }
  0x6a   :  { %265 = vmatmul.mubr.f32.vlgmr.msra.gmra.mrb[0].mxu0 %v40_v20 }
  0x6b   :  { %522 = vmatmul.mubr.f32.vlgmr.msra.gmra.mrb[0].mxu1 %v40_v20  ;;  %270 = vmatprep.mubr.f32.mxu0 %v43_v21 }
  0x6c   :  { %526 = vmatprep.mubr.f32.mxu1 %v43_v21 }
  0x6e   :  { %271 = vmatmul.mubr.f32.gmra.mrb[2].mxu0 %v42_v22 }
  0x6f   :  { %527 = vmatmul.mubr.f32.gmra.mrb[2].mxu1 %v42_v22  ;;  %276 = vmatprep.mubr.f32.mxu0 %v45_v23 }
  0x70   :  { %531 = vmatprep.mubr.f32.mxu1 %v45_v23 }
  0x72   :  { %277 = vmatmul.mubr.f32.gmra.mrb[4].mxu0 %v44_v24 }
  0x73   :  { %532 = vmatmul.mubr.f32.gmra.mrb[4].mxu1 %v44_v24  ;;  %282 = vmatprep.mubr.f32.mxu0 %v47_v25 }
  0x74   :  { %536 = vmatprep.mubr.f32.mxu1 %v47_v25 }
  0x76   :  { %283 = vmatmul.mubr.f32.gmra.mrb[6].mxu0 %v46_v0 }
  0x77   :  { %537 = vmatmul.mubr.f32.gmra.mrb[6].mxu1 %v46_v0  ;;  %288 = vmatprep.mubr.f32.mxu0 %v49_v26 }
  0x78   :  { %541 = vmatprep.mubr.f32.mxu1 %v49_v26 }
  0x7a   :  { %289 = vmatmul.mubr.f32.gmra.mrb[8].mxu0 %v48_v27 }
  0x7b   :  { %542 = vmatmul.mubr.f32.gmra.mrb[8].mxu1 %v48_v27  ;;  %294 = vmatprep.mubr.f32.mxu0 %v51_v28 }
  0x7c   :  { %546 = vmatprep.mubr.f32.mxu1 %v51_v28 }
  0x7e   :  { %295 = vmatmul.mubr.f32.gmra.mrb[10].mxu0 %v50_v29 }
  0x7f   :  { %547 = vmatmul.mubr.f32.gmra.mrb[10].mxu1 %v50_v29  ;;  %300 = vmatprep.mubr.f32.mxu0 %v53_v30 }
  0x80   :  { %551 = vmatprep.mubr.f32.mxu1 %v53_v30 }
  0x82   :  { %301 = vmatmul.mubr.f32.gmra.mrb[12].mxu0 %v52_v31 }
  0x83   :  { %552 = vmatmul.mubr.f32.gmra.mrb[12].mxu1 %v52_v31  ;;  %306 = vmatprep.mubr.f32.mxu0 %v55_v32 }
  0x84   :  { %556 = vmatprep.mubr.f32.mxu1 %v55_v32 }
  0x86   :  { %307 = vmatmul.mubr.f32.gmra.mrb[14].mxu0 %v54_v33 }
  0x87   :  { %557 = vmatmul.mubr.f32.gmra.mrb[14].mxu1 %v54_v33  ;;  %312 = vmatprep.mubr.f32.mxu0 %v57_v34 }
  0x88   :  { %561 = vmatprep.mubr.f32.mxu1 %v57_v34 }
  0x8a   :  { %313 = vmatmul.mubr.f32.gmra.mrb[16].mxu0 %v56_v35 }
  0x8b   :  { %562 = vmatmul.mubr.f32.gmra.mrb[16].mxu1 %v56_v35  ;;  %318 = vmatprep.mubr.f32.mxu0 %v59_v36 }
  0x8c   :  { %566 = vmatprep.mubr.f32.mxu1 %v59_v36 }
  0x8e   :  { %319 = vmatmul.mubr.f32.gmra.mrb[18].mxu0 %v58_v37 }
  0x8f   :  { %567 = vmatmul.mubr.f32.gmra.mrb[18].mxu1 %v58_v37  ;;  %324 = vmatprep.mubr.f32.mxu0 %v61_v38 }
  0x90   :  { %571 = vmatprep.mubr.f32.mxu1 %v61_v38 }
  0x92   :  { %325 = vmatmul.mubr.f32.gmra.mrb[20].mxu0 %v60_v39 }
  0x93   :  { %572 = vmatmul.mubr.f32.gmra.mrb[20].mxu1 %v60_v39  ;;  %330 = vmatprep.mubr.f32.mxu0 %v63_v40 }
  0x94   :  { %576 = vmatprep.mubr.f32.mxu1 %v63_v40 }
  0x96   :  { %331 = vmatmul.mubr.f32.gmra.mrb[22].mxu0 %v62_v41 }
  0x97   :  { %577 = vmatmul.mubr.f32.gmra.mrb[22].mxu1 %v62_v41  ;;  %336 = vmatprep.mubr.f32.mxu0 %v65_v42 }
  0x98   :  { %581 = vmatprep.mubr.f32.mxu1 %v65_v42 }
  0x9a   :  { %337 = vmatmul.mubr.f32.gmra.mrb[24].mxu0 %v64_v43 }
  0x9b   :  { %582 = vmatmul.mubr.f32.gmra.mrb[24].mxu1 %v64_v43  ;;  %342 = vmatprep.mubr.f32.mxu0 %v67_v44 }
  0x9c   :  { %586 = vmatprep.mubr.f32.mxu1 %v67_v44 }
  0x9e   :  { %343 = vmatmul.mubr.f32.gmra.mrb[26].mxu0 %v66_v45 }
  0x9f   :  { %587 = vmatmul.mubr.f32.gmra.mrb[26].mxu1 %v66_v45  ;;  %348 = vmatprep.mubr.f32.mxu0 %v69_v46 }
  0xa0   :  { %591 = vmatprep.mubr.f32.mxu1 %v69_v46 }
  0xa2   :  { %349 = vmatmul.mubr.f32.gmra.mrb[28].mxu0 %v68_v47 }
  0xa3   :  { %592 = vmatmul.mubr.f32.gmra.mrb[28].mxu1 %v68_v47  ;;  %354 = vmatprep.mubr.f32.mxu0 %v71_v48 }
  0xa4   :  { %596 = vmatprep.mubr.f32.mxu1 %v71_v48 }
  0xa6   :  { %355 = vmatmul.mubr.f32.gmra.mrb[30].mxu0 %v70_v49 }
  0xa7   :  { %597 = vmatmul.mubr.f32.gmra.mrb[30].mxu1 %v70_v49  ;;  %360 = vmatprep.mubr.f32.mxu0 %v73_v50 }
  0xa8   :  { %601 = vmatprep.mubr.f32.mxu1 %v73_v50 }
  0xaa   :  { %361 = vmatmul.mubr.f32.gmra.mrb[32].mxu0 %v72_v51 }
  0xab   :  { %602 = vmatmul.mubr.f32.gmra.mrb[32].mxu1 %v72_v51  ;;  %366 = vmatprep.mubr.f32.mxu0 %v75_v52 }
  0xac   :  { %606 = vmatprep.mubr.f32.mxu1 %v75_v52 }
  0xae   :  { %367 = vmatmul.mubr.f32.gmra.mrb[34].mxu0 %v74_v53 }
  0xaf   :  { %607 = vmatmul.mubr.f32.gmra.mrb[34].mxu1 %v74_v53  ;;  %372 = vmatprep.mubr.f32.mxu0 %v77_v54 }
  0xb0   :  { %611 = vmatprep.mubr.f32.mxu1 %v77_v54 }
  0xb2   :  { %373 = vmatmul.mubr.f32.gmra.mrb[36].mxu0 %v76_v55 }
  0xb3   :  { %612 = vmatmul.mubr.f32.gmra.mrb[36].mxu1 %v76_v55  ;;  %378 = vmatprep.mubr.f32.mxu0 %v79_v56 }
  0xb4   :  { %616 = vmatprep.mubr.f32.mxu1 %v79_v56 }
  0xb6   :  { %379 = vmatmul.mubr.f32.gmra.mrb[38].mxu0 %v78_v57 }
  0xb7   :  { %617 = vmatmul.mubr.f32.gmra.mrb[38].mxu1 %v78_v57  ;;  %384 = vmatprep.mubr.f32.mxu0 %v81_v58 }
  0xb8   :  { %621 = vmatprep.mubr.f32.mxu1 %v81_v58 }
  0xba   :  { %385 = vmatmul.mubr.f32.gmra.mrb[40].mxu0 %v80_v59 }
  0xbb   :  { %622 = vmatmul.mubr.f32.gmra.mrb[40].mxu1 %v80_v59  ;;  %390 = vmatprep.mubr.f32.mxu0 %v83_v60 }
  0xbc   :  { %626 = vmatprep.mubr.f32.mxu1 %v83_v60 }
  0xbe   :  { %391 = vmatmul.mubr.f32.gmra.mrb[42].mxu0 %v82_v61 }
  0xbf   :  { %627 = vmatmul.mubr.f32.gmra.mrb[42].mxu1 %v82_v61  ;;  %396 = vmatprep.mubr.f32.mxu0 %v85_v62 }
  0xc0   :  { %631 = vmatprep.mubr.f32.mxu1 %v85_v62 }
  0xc2   :  { %397 = vmatmul.mubr.f32.gmra.mrb[44].mxu0 %v84_v63 }
  0xc3   :  { %632 = vmatmul.mubr.f32.gmra.mrb[44].mxu1 %v84_v63  ;;  %402 = vmatprep.mubr.f32.mxu0 %v87_v1 }
  0xc4   :  { %636 = vmatprep.mubr.f32.mxu1 %v87_v1 }
  0xc6   :  { %403 = vmatmul.mubr.f32.gmra.mrb[46].mxu0 %v86_v2 }
  0xc7   :  { %637 = vmatmul.mubr.f32.gmra.mrb[46].mxu1 %v86_v2  ;;  %408 = vmatprep.mubr.f32.mxu0 %v89_v3 }
  0xc8   :  { %641 = vmatprep.mubr.f32.mxu1 %v89_v3 }
  0xca   :  { %409 = vmatmul.mubr.f32.gmra.mrb[48].mxu0 %v88_v4 }
  0xcb   :  { %642 = vmatmul.mubr.f32.gmra.mrb[48].mxu1 %v88_v4  ;;  %414 = vmatprep.mubr.f32.mxu0 %v91_v5 }
  0xcc   :  { %646 = vmatprep.mubr.f32.mxu1 %v91_v5 }
  0xce   :  { %415 = vmatmul.mubr.f32.gmra.mrb[50].mxu0 %v90_v6 }
  0xcf   :  { %647 = vmatmul.mubr.f32.gmra.mrb[50].mxu1 %v90_v6  ;;  %420 = vmatprep.mubr.f32.mxu0 %v93_v7 }
  0xd0   :  { %651 = vmatprep.mubr.f32.mxu1 %v93_v7 }
  0xd2   :  { %421 = vmatmul.mubr.f32.gmra.mrb[52].mxu0 %v92_v8 }
  0xd3   :  { %652 = vmatmul.mubr.f32.gmra.mrb[52].mxu1 %v92_v8  ;;  %426 = vmatprep.mubr.f32.mxu0 %v95_v9 }
  0xd4   :  { %656 = vmatprep.mubr.f32.mxu1 %v95_v9 }
  0xd6   :  { %427 = vmatmul.mubr.f32.gmra.mrb[54].mxu0 %v94_v10 }
  0xd7   :  { %657 = vmatmul.mubr.f32.gmra.mrb[54].mxu1 %v94_v10  ;;  %432 = vmatprep.mubr.f32.mxu0 %v97_v11 }
  0xd8   :  { %661 = vmatprep.mubr.f32.mxu1 %v97_v11 }
  0xda   :  { %433 = vmatmul.mubr.f32.gmra.mrb[56].mxu0 %v96_v12 }
  0xdb   :  { %662 = vmatmul.mubr.f32.gmra.mrb[56].mxu1 %v96_v12  ;;  %438 = vmatprep.mubr.f32.mxu0 %v99_v13 }
  0xdc   :  { %666 = vmatprep.mubr.f32.mxu1 %v99_v13 }
  0xde   :  { %439 = vmatmul.mubr.f32.gmra.mrb[58].mxu0 %v98_v14 }
  0xdf   :  { %667 = vmatmul.mubr.f32.gmra.mrb[58].mxu1 %v98_v14  ;;  %444 = vmatprep.mubr.f32.mxu0 %v101_v15 }
  0xe0   :  { %671 = vmatprep.mubr.f32.mxu1 %v101_v15 }
  0xe2   :  { %445 = vmatmul.mubr.f32.gmra.mrb[60].mxu0 %v100_v16 }
  0xe3   :  { %672 = vmatmul.mubr.f32.gmra.mrb[60].mxu1 %v100_v16  ;;  %450 = vmatprep.mubr.f32.mxu0 %v103_v17 }
  0xe4   :  { %676 = vmatprep.mubr.f32.mxu1 %v103_v17 }
  0xe6   :  { %451 = vmatmul.mubr.f32.gmra.mrb[62].mxu0 %v102_v18 }
  0xe7   :  { %677 = vmatmul.mubr.f32.gmra.mrb[62].mxu1 %v102_v18 }
 0x13d   :  { %v266_v19 = vpop.f32.mrb[0].mxu0 }
 0x13e   :  { %v523_v20 = vpop.f32.mrb[0].mxu1  ;;  %682 = vst [vmem:[#allocation7] sm:$0xff] %v266_v19  ;;  %v268_v21 = vpop.f32.mrb[1].mxu0 }
 0x13f   :  { %684 = vst [vmem:[#allocation7 + $0x10] sm:$0xff] %v523_v20  ;;  %v525_v22 = vpop.f32.mrb[1].mxu1  ;;  %683 = vst [vmem:[#allocation7 + $0x8] sm:$0xff] %v268_v21 }
 0x141   :  { %v272_v23 = vpop.f32.mrb[2].mxu0 }
 0x142   :  { %v528_v24 = vpop.f32.mrb[2].mxu1  ;;  %685 = vst [vmem:[#allocation7 + $0x18] sm:$0xff] %v272_v23  ;;  %v274_v25 = vpop.f32.mrb[3].mxu0 }
 0x143   :  { %687 = vst [vmem:[#allocation7 + $0x28] sm:$0xff] %v528_v24  ;;  %v530_v0 = vpop.f32.mrb[3].mxu1  ;;  %686 = vst [vmem:[#allocation7 + $0x20] sm:$0xff] %v274_v25 }
 0x145   :  { %v278_v26 = vpop.f32.mrb[4].mxu0 }
 0x146   :  { %v533_v27 = vpop.f32.mrb[4].mxu1  ;;  %688 = vst [vmem:[#allocation7 + $0x30] sm:$0xff] %v278_v26  ;;  %v280_v28 = vpop.f32.mrb[5].mxu0 }
 0x147   :  { %690 = vst [vmem:[#allocation7 + $0x40] sm:$0xff] %v533_v27  ;;  %v535_v29 = vpop.f32.mrb[5].mxu1  ;;  %689 = vst [vmem:[#allocation7 + $0x38] sm:$0xff] %v280_v28 }
 0x149   :  { %v284_v30 = vpop.f32.mrb[6].mxu0 }
 0x14a   :  { %v538_v31 = vpop.f32.mrb[6].mxu1  ;;  %691 = vst [vmem:[#allocation7 + $0x48] sm:$0xff] %v284_v30  ;;  %v286_v32 = vpop.f32.mrb[7].mxu0 }
 0x14b   :  { %693 = vst [vmem:[#allocation7 + $0x58] sm:$0xff] %v538_v31  ;;  %v540_v33 = vpop.f32.mrb[7].mxu1  ;;  %692 = vst [vmem:[#allocation7 + $0x50] sm:$0xff] %v286_v32 }
 0x14d   :  { %v290_v34 = vpop.f32.mrb[8].mxu0 }
 0x14e   :  { %v543_v35 = vpop.f32.mrb[8].mxu1  ;;  %694 = vst [vmem:[#allocation7 + $0x60] sm:$0xff] %v290_v34  ;;  %v292_v36 = vpop.f32.mrb[9].mxu0 }
 0x14f   :  { %696 = vst [vmem:[#allocation7 + $0x70] sm:$0xff] %v543_v35  ;;  %v545_v37 = vpop.f32.mrb[9].mxu1  ;;  %695 = vst [vmem:[#allocation7 + $0x68] sm:$0xff] %v292_v36 }
 0x151   :  { %v296_v38 = vpop.f32.mrb[10].mxu0 }
 0x152   :  { %v548_v39 = vpop.f32.mrb[10].mxu1  ;;  %697 = vst [vmem:[#allocation7 + $0x78] sm:$0xff] %v296_v38  ;;  %v298_v40 = vpop.f32.mrb[11].mxu0 }
 0x153   :  { %699 = vst [vmem:[#allocation7 + $0x88] sm:$0xff] %v548_v39  ;;  %v550_v41 = vpop.f32.mrb[11].mxu1  ;;  %698 = vst [vmem:[#allocation7 + $0x80] sm:$0xff] %v298_v40 }
 0x155   :  { %v302_v42 = vpop.f32.mrb[12].mxu0 }
 0x156   :  { %v553_v43 = vpop.f32.mrb[12].mxu1  ;;  %700 = vst [vmem:[#allocation7 + $0x90] sm:$0xff] %v302_v42  ;;  %v304_v44 = vpop.f32.mrb[13].mxu0 }
 0x157   :  { %702 = vst [vmem:[#allocation7 + $0xa0] sm:$0xff] %v553_v43  ;;  %v555_v45 = vpop.f32.mrb[13].mxu1  ;;  %701 = vst [vmem:[#allocation7 + $0x98] sm:$0xff] %v304_v44 }
 0x159   :  { %v308_v46 = vpop.f32.mrb[14].mxu0 }
 0x15a   :  { %v558_v47 = vpop.f32.mrb[14].mxu1  ;;  %703 = vst [vmem:[#allocation7 + $0xa8] sm:$0xff] %v308_v46  ;;  %v310_v48 = vpop.f32.mrb[15].mxu0 }
 0x15b   :  { %705 = vst [vmem:[#allocation7 + $0xb8] sm:$0xff] %v558_v47  ;;  %v560_v49 = vpop.f32.mrb[15].mxu1  ;;  %704 = vst [vmem:[#allocation7 + $0xb0] sm:$0xff] %v310_v48 }
 0x15d   :  { %v314_v50 = vpop.f32.mrb[16].mxu0 }
 0x15e   :  { %v563_v51 = vpop.f32.mrb[16].mxu1  ;;  %706 = vst [vmem:[#allocation7 + $0xc0] sm:$0xff] %v314_v50  ;;  %v316_v52 = vpop.f32.mrb[17].mxu0 }
 0x15f   :  { %708 = vst [vmem:[#allocation7 + $0xd0] sm:$0xff] %v563_v51  ;;  %v565_v53 = vpop.f32.mrb[17].mxu1  ;;  %707 = vst [vmem:[#allocation7 + $0xc8] sm:$0xff] %v316_v52 }
 0x161   :  { %v320_v54 = vpop.f32.mrb[18].mxu0 }
 0x162   :  { %v568_v55 = vpop.f32.mrb[18].mxu1  ;;  %709 = vst [vmem:[#allocation7 + $0xd8] sm:$0xff] %v320_v54  ;;  %v322_v56 = vpop.f32.mrb[19].mxu0 }
 0x163   :  { %711 = vst [vmem:[#allocation7 + $0xe8] sm:$0xff] %v568_v55  ;;  %v570_v57 = vpop.f32.mrb[19].mxu1  ;;  %710 = vst [vmem:[#allocation7 + $0xe0] sm:$0xff] %v322_v56 }
 0x165   :  { %v326_v58 = vpop.f32.mrb[20].mxu0 }
 0x166   :  { %v573_v59 = vpop.f32.mrb[20].mxu1  ;;  %712 = vst [vmem:[#allocation7 + $0xf0] sm:$0xff] %v326_v58  ;;  %v328_v60 = vpop.f32.mrb[21].mxu0 }
 0x167   :  { %714 = vst [vmem:[#allocation7 + $0x100] sm:$0xff] %v573_v59  ;;  %v575_v61 = vpop.f32.mrb[21].mxu1  ;;  %713 = vst [vmem:[#allocation7 + $0xf8] sm:$0xff] %v328_v60 }
 0x169   :  { %v332_v62 = vpop.f32.mrb[22].mxu0 }
 0x16a   :  { %v578_v63 = vpop.f32.mrb[22].mxu1  ;;  %715 = vst [vmem:[#allocation7 + $0x108] sm:$0xff] %v332_v62  ;;  %v334_v1 = vpop.f32.mrb[23].mxu0 }
 0x16b   :  { %717 = vst [vmem:[#allocation7 + $0x118] sm:$0xff] %v578_v63  ;;  %v580_v2 = vpop.f32.mrb[23].mxu1  ;;  %716 = vst [vmem:[#allocation7 + $0x110] sm:$0xff] %v334_v1 }
 0x16d   :  { %v338_v3 = vpop.f32.mrb[24].mxu0 }
 0x16e   :  { %v583_v4 = vpop.f32.mrb[24].mxu1  ;;  %718 = vst [vmem:[#allocation7 + $0x120] sm:$0xff] %v338_v3  ;;  %v340_v5 = vpop.f32.mrb[25].mxu0 }
 0x16f   :  { %720 = vst [vmem:[#allocation7 + $0x130] sm:$0xff] %v583_v4  ;;  %v585_v6 = vpop.f32.mrb[25].mxu1  ;;  %719 = vst [vmem:[#allocation7 + $0x128] sm:$0xff] %v340_v5 }
 0x171   :  { %v344_v7 = vpop.f32.mrb[26].mxu0 }
 0x172   :  { %v588_v8 = vpop.f32.mrb[26].mxu1  ;;  %721 = vst [vmem:[#allocation7 + $0x138] sm:$0xff] %v344_v7  ;;  %v346_v9 = vpop.f32.mrb[27].mxu0 }
 0x173   :  { %723 = vst [vmem:[#allocation7 + $0x148] sm:$0xff] %v588_v8  ;;  %v590_v10 = vpop.f32.mrb[27].mxu1  ;;  %722 = vst [vmem:[#allocation7 + $0x140] sm:$0xff] %v346_v9 }
 0x175   :  { %v350_v11 = vpop.f32.mrb[28].mxu0 }
 0x176   :  { %v593_v12 = vpop.f32.mrb[28].mxu1  ;;  %724 = vst [vmem:[#allocation7 + $0x150] sm:$0xff] %v350_v11  ;;  %v352_v13 = vpop.f32.mrb[29].mxu0 }
 0x177   :  { %726 = vst [vmem:[#allocation7 + $0x160] sm:$0xff] %v593_v12  ;;  %v595_v14 = vpop.f32.mrb[29].mxu1  ;;  %725 = vst [vmem:[#allocation7 + $0x158] sm:$0xff] %v352_v13 }
 0x179   :  { %v356_v15 = vpop.f32.mrb[30].mxu0 }
 0x17a   :  { %v598_v16 = vpop.f32.mrb[30].mxu1  ;;  %727 = vst [vmem:[#allocation7 + $0x168] sm:$0xff] %v356_v15  ;;  %v358_v17 = vpop.f32.mrb[31].mxu0 }
 0x17b   :  { %729 = vst [vmem:[#allocation7 + $0x178] sm:$0xff] %v598_v16  ;;  %v600_v18 = vpop.f32.mrb[31].mxu1  ;;  %728 = vst [vmem:[#allocation7 + $0x170] sm:$0xff] %v358_v17 }
 0x17d   :  { %v362_v19 = vpop.f32.mrb[32].mxu0 }
 0x17e   :  { %v603_v20 = vpop.f32.mrb[32].mxu1  ;;  %730 = vst [vmem:[#allocation7 + $0x180] sm:$0xff] %v362_v19  ;;  %v364_v21 = vpop.f32.mrb[33].mxu0 }
 0x17f   :  { %732 = vst [vmem:[#allocation7 + $0x190] sm:$0xff] %v603_v20  ;;  %v605_v22 = vpop.f32.mrb[33].mxu1  ;;  %731 = vst [vmem:[#allocation7 + $0x188] sm:$0xff] %v364_v21 }
 0x181   :  { %v368_v23 = vpop.f32.mrb[34].mxu0 }
 0x182   :  { %v608_v24 = vpop.f32.mrb[34].mxu1  ;;  %733 = vst [vmem:[#allocation7 + $0x198] sm:$0xff] %v368_v23  ;;  %v370_v25 = vpop.f32.mrb[35].mxu0 }
 0x183   :  { %735 = vst [vmem:[#allocation7 + $0x1a8] sm:$0xff] %v608_v24  ;;  %v610_v0 = vpop.f32.mrb[35].mxu1  ;;  %734 = vst [vmem:[#allocation7 + $0x1a0] sm:$0xff] %v370_v25 }
 0x185   :  { %v374_v26 = vpop.f32.mrb[36].mxu0 }
 0x186   :  { %v613_v27 = vpop.f32.mrb[36].mxu1  ;;  %736 = vst [vmem:[#allocation7 + $0x1b0] sm:$0xff] %v374_v26  ;;  %v376_v28 = vpop.f32.mrb[37].mxu0 }
 0x187   :  { %738 = vst [vmem:[#allocation7 + $0x1c0] sm:$0xff] %v613_v27  ;;  %v615_v29 = vpop.f32.mrb[37].mxu1  ;;  %737 = vst [vmem:[#allocation7 + $0x1b8] sm:$0xff] %v376_v28 }
 0x189   :  { %v380_v30 = vpop.f32.mrb[38].mxu0 }
 0x18a   :  { %v618_v31 = vpop.f32.mrb[38].mxu1  ;;  %739 = vst [vmem:[#allocation7 + $0x1c8] sm:$0xff] %v380_v30  ;;  %v382_v32 = vpop.f32.mrb[39].mxu0 }
 0x18b   :  { %741 = vst [vmem:[#allocation7 + $0x1d8] sm:$0xff] %v618_v31  ;;  %v620_v33 = vpop.f32.mrb[39].mxu1  ;;  %740 = vst [vmem:[#allocation7 + $0x1d0] sm:$0xff] %v382_v32 }
 0x18d   :  { %v386_v34 = vpop.f32.mrb[40].mxu0 }
 0x18e   :  { %v623_v35 = vpop.f32.mrb[40].mxu1  ;;  %742 = vst [vmem:[#allocation7 + $0x1e0] sm:$0xff] %v386_v34  ;;  %v388_v36 = vpop.f32.mrb[41].mxu0 }
 0x18f   :  { %744 = vst [vmem:[#allocation7 + $0x1f0] sm:$0xff] %v623_v35  ;;  %v625_v37 = vpop.f32.mrb[41].mxu1  ;;  %743 = vst [vmem:[#allocation7 + $0x1e8] sm:$0xff] %v388_v36 }
 0x191   :  { %v392_v38 = vpop.f32.mrb[42].mxu0 }
 0x192   :  { %v628_v39 = vpop.f32.mrb[42].mxu1  ;;  %745 = vst [vmem:[#allocation7 + $0x1f8] sm:$0xff] %v392_v38  ;;  %v394_v40 = vpop.f32.mrb[43].mxu0 }
 0x193   :  { %747 = vst [vmem:[#allocation7 + $0x208] sm:$0xff] %v628_v39  ;;  %v630_v41 = vpop.f32.mrb[43].mxu1  ;;  %746 = vst [vmem:[#allocation7 + $0x200] sm:$0xff] %v394_v40 }
 0x195   :  { %v398_v42 = vpop.f32.mrb[44].mxu0 }
 0x196   :  { %v633_v43 = vpop.f32.mrb[44].mxu1  ;;  %748 = vst [vmem:[#allocation7 + $0x210] sm:$0xff] %v398_v42  ;;  %v400_v44 = vpop.f32.mrb[45].mxu0 }
 0x197   :  { %750 = vst [vmem:[#allocation7 + $0x220] sm:$0xff] %v633_v43  ;;  %v635_v45 = vpop.f32.mrb[45].mxu1  ;;  %749 = vst [vmem:[#allocation7 + $0x218] sm:$0xff] %v400_v44 }
 0x199   :  { %v404_v46 = vpop.f32.mrb[46].mxu0 }
 0x19a   :  { %v638_v47 = vpop.f32.mrb[46].mxu1  ;;  %751 = vst [vmem:[#allocation7 + $0x228] sm:$0xff] %v404_v46  ;;  %v406_v48 = vpop.f32.mrb[47].mxu0 }
 0x19b   :  { %753 = vst [vmem:[#allocation7 + $0x238] sm:$0xff] %v638_v47  ;;  %v640_v49 = vpop.f32.mrb[47].mxu1  ;;  %752 = vst [vmem:[#allocation7 + $0x230] sm:$0xff] %v406_v48 }
 0x19d   :  { %v410_v50 = vpop.f32.mrb[48].mxu0 }
 0x19e   :  { %v643_v51 = vpop.f32.mrb[48].mxu1  ;;  %754 = vst [vmem:[#allocation7 + $0x240] sm:$0xff] %v410_v50  ;;  %v412_v52 = vpop.f32.mrb[49].mxu0 }
 0x19f   :  { %756 = vst [vmem:[#allocation7 + $0x250] sm:$0xff] %v643_v51  ;;  %v645_v53 = vpop.f32.mrb[49].mxu1  ;;  %755 = vst [vmem:[#allocation7 + $0x248] sm:$0xff] %v412_v52 }
 0x1a1   :  { %v416_v54 = vpop.f32.mrb[50].mxu0 }
 0x1a2   :  { %v648_v55 = vpop.f32.mrb[50].mxu1  ;;  %757 = vst [vmem:[#allocation7 + $0x258] sm:$0xff] %v416_v54  ;;  %v418_v56 = vpop.f32.mrb[51].mxu0 }
 0x1a3   :  { %759 = vst [vmem:[#allocation7 + $0x268] sm:$0xff] %v648_v55  ;;  %v650_v57 = vpop.f32.mrb[51].mxu1  ;;  %758 = vst [vmem:[#allocation7 + $0x260] sm:$0xff] %v418_v56 }
 0x1a5   :  { %v422_v58 = vpop.f32.mrb[52].mxu0 }
 0x1a6   :  { %v653_v59 = vpop.f32.mrb[52].mxu1  ;;  %760 = vst [vmem:[#allocation7 + $0x270] sm:$0xff] %v422_v58  ;;  %v424_v60 = vpop.f32.mrb[53].mxu0 }
 0x1a7   :  { %762 = vst [vmem:[#allocation7 + $0x280] sm:$0xff] %v653_v59  ;;  %v655_v61 = vpop.f32.mrb[53].mxu1  ;;  %761 = vst [vmem:[#allocation7 + $0x278] sm:$0xff] %v424_v60 }
 0x1a9   :  { %v428_v62 = vpop.f32.mrb[54].mxu0 }
 0x1aa   :  { %v658_v63 = vpop.f32.mrb[54].mxu1  ;;  %763 = vst [vmem:[#allocation7 + $0x288] sm:$0xff] %v428_v62  ;;  %v430_v1 = vpop.f32.mrb[55].mxu0 }
 0x1ab   :  { %765 = vst [vmem:[#allocation7 + $0x298] sm:$0xff] %v658_v63  ;;  %v660_v2 = vpop.f32.mrb[55].mxu1  ;;  %764 = vst [vmem:[#allocation7 + $0x290] sm:$0xff] %v430_v1 }
 0x1ad   :  { %v434_v3 = vpop.f32.mrb[56].mxu0 }
 0x1ae   :  { %v663_v4 = vpop.f32.mrb[56].mxu1  ;;  %766 = vst [vmem:[#allocation7 + $0x2a0] sm:$0xff] %v434_v3  ;;  %v436_v5 = vpop.f32.mrb[57].mxu0 }
 0x1af   :  { %768 = vst [vmem:[#allocation7 + $0x2b0] sm:$0xff] %v663_v4  ;;  %v665_v6 = vpop.f32.mrb[57].mxu1  ;;  %767 = vst [vmem:[#allocation7 + $0x2a8] sm:$0xff] %v436_v5 }
 0x1b1   :  { %v440_v7 = vpop.f32.mrb[58].mxu0 }
 0x1b2   :  { %v668_v8 = vpop.f32.mrb[58].mxu1  ;;  %769 = vst [vmem:[#allocation7 + $0x2b8] sm:$0xff] %v440_v7  ;;  %v442_v9 = vpop.f32.mrb[59].mxu0 }
 0x1b3   :  { %771 = vst [vmem:[#allocation7 + $0x2c8] sm:$0xff] %v668_v8  ;;  %v670_v10 = vpop.f32.mrb[59].mxu1  ;;  %770 = vst [vmem:[#allocation7 + $0x2c0] sm:$0xff] %v442_v9 }
 0x1b5   :  { %v446_v11 = vpop.f32.mrb[60].mxu0 }
 0x1b6   :  { %v673_v12 = vpop.f32.mrb[60].mxu1  ;;  %772 = vst [vmem:[#allocation7 + $0x2d0] sm:$0xff] %v446_v11  ;;  %v448_v13 = vpop.f32.mrb[61].mxu0 }
 0x1b7   :  { %774 = vst [vmem:[#allocation7 + $0x2e0] sm:$0xff] %v673_v12  ;;  %v675_v14 = vpop.f32.mrb[61].mxu1  ;;  %773 = vst [vmem:[#allocation7 + $0x2d8] sm:$0xff] %v448_v13 }
 0x1b9   :  { %v452_v15 = vpop.f32.mrb[62].mxu0 }
 0x1ba   :  { %v678_v16 = vpop.f32.mrb[62].mxu1  ;;  %775 = vst [vmem:[#allocation7 + $0x2e8] sm:$0xff] %v452_v15  ;;  %v454_v17 = vpop.f32.mrb[63].mxu0 }
 0x1bb   :  { %777 = vst [vmem:[#allocation7 + $0x2f8] sm:$0xff] %v678_v16  ;;  %v680_v18 = vpop.f32.mrb[63].mxu1  ;;  %776 = vst [vmem:[#allocation7 + $0x2f0] sm:$0xff] %v454_v17 }
 0x1bc   :  { %971 = shalt.err (!%p968_p6)
}
 0x1bd   :  { %s972_s12 = scalar_lea.hbm %s1071_s2, 12288 }
 0x1be   :  { %p973_p7 = scmp.ne.s32.totalorder %s1071_s2, %s972_s12  ;;  %p976_p8 = scmp.lt.u32.totalorder %s972_s12, %s1071_s2 }
 0x1c0   :  { %p978_p9 = pnand %p976_p8, %p973_p7 }
 0x1c2   :  { %981 = shalt.err (!%p978_p9)
}
 0x1c3   :  { %789 = dma.vmem_to_hbm [thread:$0]  %s784_s8, 12288, %s1071_s2, [#allocation4], %s992_s0, %s992_s0, %s993_s5  }
 0x1c4   :  { %986 = dma.done.wait [#allocation4], 12288  }
 0x1c5   :  { %987 = vsyncadd [#allocation4], 4294955008 }
 0x1c6   :  { %793 = vsyncpa [#allocation3], 1 }
 0x1c7   :  { %794 = vsyncpa [#allocation6], 1 }
 0x1c8   :  { %795 = vsyncpa [#allocation4], 1 }

</bundles_post_ra>
